<compile_context>
chip_gen: v6e
topology: v6e:2x2x1
jax: 0.10.0
libtpu: 0.0.40
codegen_flags: <defaults>
</compile_context>

<pallas_src>
import functools

import jax
import jax.numpy as jnp
from jax import lax
from jax.experimental import pallas as pl
from jax.experimental.pallas import tpu as pltpu


def lstm_classifier_kernel(x_ref, wi1_ref, b1_ref, wh1p_ref, w2p_ref, b2_ref,
                           gamma_ref, beta_ref, wfc_ref, bfc_ref, out_ref):
    # x_ref: (T*B, I) with time-major rows (row = t*B + b); out_ref: (B, O)
    B = out_ref.shape[0]
    TB, _ = x_ref.shape
    T = TB // B
    G = wh1p_ref.shape[1]          # 4 * H  (gate width; 128 lanes here)
    H = G // 4
    f32 = jnp.float32

    # ---- Hoisted layer-1 input projection: one big matmul, off the recurrent path ----
    z1_all = (jnp.dot(x_ref[...].astype(f32), wi1_ref[...],
                      preferred_element_type=f32)
              + b1_ref[...])                                  # (T*B, 4H), b1 folded in

    b2 = jnp.broadcast_to(b2_ref[...], (B, G))                # hoisted broadcast

    def gates(z, c_full):
        # Full-width EUP activations, then XLU rolls to align f/g/o onto lanes [0, H)
        # instead of lane-slicing at non-128 boundaries (gate order i, f, g, o).
        sig = jax.nn.sigmoid(z)                               # i already at lanes [0, H)
        th = jnp.tanh(z)
        f_al = pltpu.roll(sig, shift=G - H, axis=1)           # f -> lanes [0, H)
        g_al = pltpu.roll(th, shift=G - 2 * H, axis=1)        # g -> lanes [0, H)
        o_al = pltpu.roll(sig, shift=G - 3 * H, axis=1)       # o -> lanes [0, H)
        c_new = f_al * c_full + sig * g_al
        h_new = o_al * jnp.tanh(c_new)
        return h_new, c_new

    zeros = jnp.zeros((B, G), f32)
    h1, c1, h2, c2 = zeros, zeros, zeros, zeros

    # Fully unrolled time loop: one MXU matmul per cell per step.
    for t in range(T):
        # Layer 1: precomputed input projection slice + recurrent matmul.
        z1 = (z1_all[t * B:(t + 1) * B, :]
              + jnp.dot(h1, wh1p_ref[...], preferred_element_type=f32))
        h1, c1 = gates(z1, c1)

        s = h1 * jax.nn.sigmoid(h1)                           # SiLU

        # Layer 2: single fused matmul over [silu(h1) | h2] with stacked padded weights.
        u = jnp.concatenate([s, h2], axis=1)                  # (B, 2*4H); 128-lane boundary
        z2 = jnp.dot(u, w2p_ref[...], preferred_element_type=f32) + b2
        h2, c2 = gates(z2, c2)

    # ---- LayerNorm over the hidden dim (eps = 1e-5, PyTorch default), last step only ----
    hT = h2[:, :H]
    mean = jnp.mean(hT, axis=-1, keepdims=True)
    var = jnp.mean((hT - mean) ** 2, axis=-1, keepdims=True)
    ln = (hT - mean) * lax.rsqrt(var + 1e-5)
    ln = ln * gamma_ref[...] + beta_ref[...]

    # TODO(synk): nn.Dropout is identity in eval mode; no stochastic dropout applied here.

    out = jnp.dot(ln, wfc_ref[...], preferred_element_type=f32) + bfc_ref[...]
    out_ref[...] = out.astype(out_ref.dtype)


@jax.jit
def lstm_classifier(x, params):
    # x: (B, T, I) batch-first, like the PyTorch module.
    B, T, I = x.shape
    H = params["wh1"].shape[0]
    G = 4 * H
    O = params["wfc"].shape[1]

    # Time-major rows so each step's precomputed projection is a contiguous 2-row slice.
    # (Negligible copy at these shapes; at scale fold into the projection / a T-grid spec.)
    x_tm = jnp.transpose(x, (1, 0, 2)).reshape(T * B, I)

    # Zero-padded / stacked recurrent weights: carries stay full 4H-lane width and each
    # cell needs exactly one matmul. Only rows [0,H) (and [4H,5H) for layer 2) are nonzero.
    wh1_p = jnp.zeros((G, G), jnp.float32).at[:H].set(params["wh1"])
    w2_p = (jnp.zeros((2 * G, G), jnp.float32)
            .at[:H].set(params["wi2"])
            .at[G:G + H].set(params["wh2"]))

    args = (x_tm, params["wi1"], params["b1"], wh1_p, w2_p, params["b2"],
            params["gamma"], params["beta"], params["wfc"], params["bfc"])

    flops = (2 * T * B * I * G            # hoisted layer-1 input projection
             + T * 2 * B * G * G          # layer-1 recurrent matmul (padded K = 4H)
             + T * 2 * B * (2 * G) * G    # layer-2 fused matmul (K = 8H)
             + 2 * B * H * O + 10 * B * H)
    transcendentals = T * B * 7 * G + 2 * B
    bytes_accessed = sum(int(a.size) * 4 for a in args) + B * O * 4

    return pl.pallas_call(
        lstm_classifier_kernel,
        out_shape=jax.ShapeDtypeStruct((B, O), jnp.float32),
        in_specs=[pl.BlockSpec(memory_space=pltpu.MemorySpace.VMEM)] * len(args),
        out_specs=pl.BlockSpec(memory_space=pltpu.MemorySpace.VMEM),
        cost_estimate=pl.CostEstimate(flops=flops,
                                      transcendentals=transcendentals,
                                      bytes_accessed=bytes_accessed),
    )(*args)


def init_params(key, num_input, num_hidden, num_output):
    """Deterministic synthetic init matching PyTorch parameter shapes.

    PyTorch stores W_ih (4H, I) / W_hh (4H, H); we pre-transpose to (I, 4H) / (H, 4H)
    and fold b_ih + b_hh into a single (1, 4H) bias. fc weight (O, H) -> (H, O).
    """
    H = num_hidden
    k = 1.0 / jnp.sqrt(jnp.asarray(H, jnp.float32))
    keys = jax.random.split(key, 10)
    u = lambda kk, shape: jax.random.uniform(kk, shape, jnp.float32, -k, k)
    params = {
        "wi1": u(keys[0], (num_input, 4 * H)),
        "wh1": u(keys[1], (H, 4 * H)),
        "b1":  u(keys[2], (1, 4 * H)) + u(keys[3], (1, 4 * H)),   # b_ih + b_hh
        "wi2": u(keys[4], (H, 4 * H)),
        "wh2": u(keys[5], (H, 4 * H)),
        "b2":  u(keys[6], (1, 4 * H)) + u(keys[7], (1, 4 * H)),
        "gamma": jnp.ones((1, H), jnp.float32),                   # LayerNorm weight
        "beta":  jnp.zeros((1, H), jnp.float32),                  # LayerNorm bias
        "wfc": u(keys[8], (H, num_output)),
        "bfc": u(keys[9], (1, num_output)),
    }
    return params


def ref_forward(x, p):
    """Pure-JAX reference (same math as the PyTorch module in eval mode)."""
    B, T, I = x.shape
    H = p["wh1"].shape[0]

    def cell(xt, h, c, wi, wh, b):
        z = xt @ wi + h @ wh + b
        i = jax.nn.sigmoid(z[:, :H])
        f = jax.nn.sigmoid(z[:, H:2 * H])
        g = jnp.tanh(z[:, 2 * H:3 * H])
        o = jax.nn.sigmoid(z[:, 3 * H:])
        c = f * c + i * g
        h = o * jnp.tanh(c)
        return h, c

    h1 = c1 = h2 = c2 = jnp.zeros((B, H), jnp.float32)
    for t in range(T):
        xt = x[:, t, :]
        h1, c1 = cell(xt, h1, c1, p["wi1"], p["wh1"], p["b1"])
        s = h1 * jax.nn.sigmoid(h1)
        h2, c2 = cell(s, h2, c2, p["wi2"], p["wh2"], p["b2"])
    mean = h2.mean(-1, keepdims=True)
    var = ((h2 - mean) ** 2).mean(-1, keepdims=True)
    ln = (h2 - mean) / jnp.sqrt(var + 1e-5) * p["gamma"] + p["beta"]
    return ln @ p["wfc"] + p["bfc"]


if __name__ == "__main__":
    B, T = 2, 8
    NUM_INPUT, NUM_HIDDEN, NUM_OUTPUT = 16, 32, 5

    key = jax.random.PRNGKey(0)
    kx, kp = jax.random.split(key)
    x = jax.random.normal(kx, (B, T, NUM_INPUT), jnp.float32)
    params = init_params(kp, NUM_INPUT, NUM_HIDDEN, NUM_OUTPUT)

    out = lstm_classifier(x, params)
    out = jax.block_until_ready(out)

    ref = ref_forward(x, params)
    assert out.shape == (B, NUM_OUTPUT), out.shape
    assert jnp.allclose(out, ref, atol=1e-3, rtol=1e-3), (
        f"max abs err {jnp.max(jnp.abs(out - ref))}")

    print("KERNEL_OK")
</pallas_src>

<mosaic_0001>
module attributes {stable_mosaic.version = 11 : i64} {
  func.func @lstm_classifier_kernel(%arg0: memref<16x16xf32, #tpu.memory_space<vmem>>, %arg1: memref<16x128xf32, #tpu.memory_space<vmem>>, %arg2: memref<1x128xf32, #tpu.memory_space<vmem>>, %arg3: memref<128x128xf32, #tpu.memory_space<vmem>>, %arg4: memref<256x128xf32, #tpu.memory_space<vmem>>, %arg5: memref<1x128xf32, #tpu.memory_space<vmem>>, %arg6: memref<1x32xf32, #tpu.memory_space<vmem>>, %arg7: memref<1x32xf32, #tpu.memory_space<vmem>>, %arg8: memref<32x5xf32, #tpu.memory_space<vmem>>, %arg9: memref<1x5xf32, #tpu.memory_space<vmem>>, %arg10: memref<2x5xf32, #tpu.memory_space<vmem>>) attributes {dimension_semantics = [], scalar_prefetch = 0 : i64, scratch_operands = 0 : i64, tpu.core_type = #tpu.core_type<tc>} {
    %c0 = arith.constant 0 : index
    %c0_0 = arith.constant 0 : index
    %0 = vector.load %arg0[%c0, %c0_0] : memref<16x16xf32, #tpu.memory_space<vmem>>, vector<16x16xf32>
    %c0_1 = arith.constant 0 : index
    %c0_2 = arith.constant 0 : index
    %1 = vector.load %arg1[%c0_1, %c0_2] : memref<16x128xf32, #tpu.memory_space<vmem>>, vector<16x128xf32>
    %cst = arith.constant dense<0.000000e+00> : vector<16x128xf32>
    %2 = tpu.matmul %0, %1, %cst {dimension_numbers = #tpu.dot_dimension_numbers<[1], [0], [0], [1], [0, 0, 1, 1], [], []>} : vector<16x16xf32>, vector<16x128xf32>, vector<16x128xf32> -> vector<16x128xf32>
    %c0_3 = arith.constant 0 : index
    %c0_4 = arith.constant 0 : index
    %3 = vector.load %arg2[%c0_3, %c0_4] : memref<1x128xf32, #tpu.memory_space<vmem>>, vector<1x128xf32>
    %4 = vector.broadcast %3 : vector<1x128xf32> to vector<16x128xf32>
    %5 = arith.addf %2, %4 : vector<16x128xf32>
    %c0_5 = arith.constant 0 : index
    %c0_6 = arith.constant 0 : index
    %6 = vector.load %arg5[%c0_5, %c0_6] : memref<1x128xf32, #tpu.memory_space<vmem>>, vector<1x128xf32>
    %7 = vector.shape_cast %6 : vector<1x128xf32> to vector<1x128xf32>
    %8 = vector.broadcast %7 : vector<1x128xf32> to vector<2x128xf32>
    %cst_7 = arith.constant 0.000000e+00 : f32
    %9 = vector.broadcast %cst_7 : f32 to vector<2x128xf32>
    %10 = vector.extract_strided_slice %5 {offsets = [0, 0], sizes = [2, 128], strides = [1, 1]} : vector<16x128xf32> to vector<2x128xf32>
    %c0_8 = arith.constant 0 : index
    %c0_9 = arith.constant 0 : index
    %11 = vector.load %arg3[%c0_8, %c0_9] : memref<128x128xf32, #tpu.memory_space<vmem>>, vector<128x128xf32>
    %cst_10 = arith.constant dense<0.000000e+00> : vector<2x128xf32>
    %12 = tpu.matmul %9, %11, %cst_10 {dimension_numbers = #tpu.dot_dimension_numbers<[1], [0], [0], [1], [0, 0, 1, 1], [], []>} : vector<2x128xf32>, vector<128x128xf32>, vector<2x128xf32> -> vector<2x128xf32>
    %13 = arith.addf %10, %12 : vector<2x128xf32>
    %14 = arith.negf %13 : vector<2x128xf32>
    %15 = math.exp %14 : vector<2x128xf32>
    %cst_11 = arith.constant 1.000000e+00 : f32
    %16 = vector.broadcast %cst_11 : f32 to vector<2x128xf32>
    %17 = arith.addf %16, %15 : vector<2x128xf32>
    %18 = arith.divf %16, %17 : vector<2x128xf32>
    %19 = math.tanh %13 : vector<2x128xf32>
    %c96_i32 = arith.constant 96 : i32
    %20 = tpu.dynamic_rotate %18 by %c96_i32 dim 1 : vector<2x128xf32>, i32 -> vector<2x128xf32>
    %c64_i32 = arith.constant 64 : i32
    %21 = tpu.dynamic_rotate %19 by %c64_i32 dim 1 : vector<2x128xf32>, i32 -> vector<2x128xf32>
    %c32_i32 = arith.constant 32 : i32
    %22 = tpu.dynamic_rotate %18 by %c32_i32 dim 1 : vector<2x128xf32>, i32 -> vector<2x128xf32>
    %23 = arith.mulf %20, %9 : vector<2x128xf32>
    %24 = arith.mulf %18, %21 : vector<2x128xf32>
    %25 = arith.addf %23, %24 : vector<2x128xf32>
    %26 = math.tanh %25 : vector<2x128xf32>
    %27 = arith.mulf %22, %26 : vector<2x128xf32>
    %28 = arith.negf %27 : vector<2x128xf32>
    %29 = math.exp %28 : vector<2x128xf32>
    %cst_12 = arith.constant 1.000000e+00 : f32
    %30 = vector.broadcast %cst_12 : f32 to vector<2x128xf32>
    %31 = arith.addf %30, %29 : vector<2x128xf32>
    %32 = arith.divf %30, %31 : vector<2x128xf32>
    %33 = arith.mulf %27, %32 : vector<2x128xf32>
    %34 = tpu.concatenate %33, %9 in 1 : vector<2x128xf32>, vector<2x128xf32> -> vector<2x256xf32>
    %c0_13 = arith.constant 0 : index
    %c0_14 = arith.constant 0 : index
    %35 = vector.load %arg4[%c0_13, %c0_14] : memref<256x128xf32, #tpu.memory_space<vmem>>, vector<256x128xf32>
    %cst_15 = arith.constant dense<0.000000e+00> : vector<2x128xf32>
    %36 = tpu.matmul %34, %35, %cst_15 {dimension_numbers = #tpu.dot_dimension_numbers<[1], [0], [0], [1], [0, 0, 1, 1], [], []>} : vector<2x256xf32>, vector<256x128xf32>, vector<2x128xf32> -> vector<2x128xf32>
    %37 = arith.addf %36, %8 : vector<2x128xf32>
    %38 = arith.negf %37 : vector<2x128xf32>
    %39 = math.exp %38 : vector<2x128xf32>
    %cst_16 = arith.constant 1.000000e+00 : f32
    %40 = vector.broadcast %cst_16 : f32 to vector<2x128xf32>
    %41 = arith.addf %40, %39 : vector<2x128xf32>
    %42 = arith.divf %40, %41 : vector<2x128xf32>
    %43 = math.tanh %37 : vector<2x128xf32>
    %c96_i32_17 = arith.constant 96 : i32
    %44 = tpu.dynamic_rotate %42 by %c96_i32_17 dim 1 : vector<2x128xf32>, i32 -> vector<2x128xf32>
    %c64_i32_18 = arith.constant 64 : i32
    %45 = tpu.dynamic_rotate %43 by %c64_i32_18 dim 1 : vector<2x128xf32>, i32 -> vector<2x128xf32>
    %c32_i32_19 = arith.constant 32 : i32
    %46 = tpu.dynamic_rotate %42 by %c32_i32_19 dim 1 : vector<2x128xf32>, i32 -> vector<2x128xf32>
    %47 = arith.mulf %44, %9 : vector<2x128xf32>
    %48 = arith.mulf %42, %45 : vector<2x128xf32>
    %49 = arith.addf %47, %48 : vector<2x128xf32>
    %50 = math.tanh %49 : vector<2x128xf32>
    %51 = arith.mulf %46, %50 : vector<2x128xf32>
    %52 = vector.extract_strided_slice %5 {offsets = [2, 0], sizes = [2, 128], strides = [1, 1]} : vector<16x128xf32> to vector<2x128xf32>
    %c0_20 = arith.constant 0 : index
    %c0_21 = arith.constant 0 : index
    %53 = vector.load %arg3[%c0_20, %c0_21] : memref<128x128xf32, #tpu.memory_space<vmem>>, vector<128x128xf32>
    %cst_22 = arith.constant dense<0.000000e+00> : vector<2x128xf32>
    %54 = tpu.matmul %27, %53, %cst_22 {dimension_numbers = #tpu.dot_dimension_numbers<[1], [0], [0], [1], [0, 0, 1, 1], [], []>} : vector<2x128xf32>, vector<128x128xf32>, vector<2x128xf32> -> vector<2x128xf32>
    %55 = arith.addf %52, %54 : vector<2x128xf32>
    %56 = arith.negf %55 : vector<2x128xf32>
    %57 = math.exp %56 : vector<2x128xf32>
    %cst_23 = arith.constant 1.000000e+00 : f32
    %58 = vector.broadcast %cst_23 : f32 to vector<2x128xf32>
    %59 = arith.addf %58, %57 : vector<2x128xf32>
    %60 = arith.divf %58, %59 : vector<2x128xf32>
    %61 = math.tanh %55 : vector<2x128xf32>
    %c96_i32_24 = arith.constant 96 : i32
    %62 = tpu.dynamic_rotate %60 by %c96_i32_24 dim 1 : vector<2x128xf32>, i32 -> vector<2x128xf32>
    %c64_i32_25 = arith.constant 64 : i32
    %63 = tpu.dynamic_rotate %61 by %c64_i32_25 dim 1 : vector<2x128xf32>, i32 -> vector<2x128xf32>
    %c32_i32_26 = arith.constant 32 : i32
    %64 = tpu.dynamic_rotate %60 by %c32_i32_26 dim 1 : vector<2x128xf32>, i32 -> vector<2x128xf32>
    %65 = arith.mulf %62, %25 : vector<2x128xf32>
    %66 = arith.mulf %60, %63 : vector<2x128xf32>
    %67 = arith.addf %65, %66 : vector<2x128xf32>
    %68 = math.tanh %67 : vector<2x128xf32>
    %69 = arith.mulf %64, %68 : vector<2x128xf32>
    %70 = arith.negf %69 : vector<2x128xf32>
    %71 = math.exp %70 : vector<2x128xf32>
    %cst_27 = arith.constant 1.000000e+00 : f32
    %72 = vector.broadcast %cst_27 : f32 to vector<2x128xf32>
    %73 = arith.addf %72, %71 : vector<2x128xf32>
    %74 = arith.divf %72, %73 : vector<2x128xf32>
    %75 = arith.mulf %69, %74 : vector<2x128xf32>
    %76 = tpu.concatenate %75, %51 in 1 : vector<2x128xf32>, vector<2x128xf32> -> vector<2x256xf32>
    %c0_28 = arith.constant 0 : index
    %c0_29 = arith.constant 0 : index
    %77 = vector.load %arg4[%c0_28, %c0_29] : memref<256x128xf32, #tpu.memory_space<vmem>>, vector<256x128xf32>
    %cst_30 = arith.constant dense<0.000000e+00> : vector<2x128xf32>
    %78 = tpu.matmul %76, %77, %cst_30 {dimension_numbers = #tpu.dot_dimension_numbers<[1], [0], [0], [1], [0, 0, 1, 1], [], []>} : vector<2x256xf32>, vector<256x128xf32>, vector<2x128xf32> -> vector<2x128xf32>
    %79 = arith.addf %78, %8 : vector<2x128xf32>
    %80 = arith.negf %79 : vector<2x128xf32>
    %81 = math.exp %80 : vector<2x128xf32>
    %cst_31 = arith.constant 1.000000e+00 : f32
    %82 = vector.broadcast %cst_31 : f32 to vector<2x128xf32>
    %83 = arith.addf %82, %81 : vector<2x128xf32>
    %84 = arith.divf %82, %83 : vector<2x128xf32>
    %85 = math.tanh %79 : vector<2x128xf32>
    %c96_i32_32 = arith.constant 96 : i32
    %86 = tpu.dynamic_rotate %84 by %c96_i32_32 dim 1 : vector<2x128xf32>, i32 -> vector<2x128xf32>
    %c64_i32_33 = arith.constant 64 : i32
    %87 = tpu.dynamic_rotate %85 by %c64_i32_33 dim 1 : vector<2x128xf32>, i32 -> vector<2x128xf32>
    %c32_i32_34 = arith.constant 32 : i32
    %88 = tpu.dynamic_rotate %84 by %c32_i32_34 dim 1 : vector<2x128xf32>, i32 -> vector<2x128xf32>
    %89 = arith.mulf %86, %49 : vector<2x128xf32>
    %90 = arith.mulf %84, %87 : vector<2x128xf32>
    %91 = arith.addf %89, %90 : vector<2x128xf32>
    %92 = math.tanh %91 : vector<2x128xf32>
    %93 = arith.mulf %88, %92 : vector<2x128xf32>
    %94 = vector.extract_strided_slice %5 {offsets = [4, 0], sizes = [2, 128], strides = [1, 1]} : vector<16x128xf32> to vector<2x128xf32>
    %c0_35 = arith.constant 0 : index
    %c0_36 = arith.constant 0 : index
    %95 = vector.load %arg3[%c0_35, %c0_36] : memref<128x128xf32, #tpu.memory_space<vmem>>, vector<128x128xf32>
    %cst_37 = arith.constant dense<0.000000e+00> : vector<2x128xf32>
    %96 = tpu.matmul %69, %95, %cst_37 {dimension_numbers = #tpu.dot_dimension_numbers<[1], [0], [0], [1], [0, 0, 1, 1], [], []>} : vector<2x128xf32>, vector<128x128xf32>, vector<2x128xf32> -> vector<2x128xf32>
    %97 = arith.addf %94, %96 : vector<2x128xf32>
    %98 = arith.negf %97 : vector<2x128xf32>
    %99 = math.exp %98 : vector<2x128xf32>
    %cst_38 = arith.constant 1.000000e+00 : f32
    %100 = vector.broadcast %cst_38 : f32 to vector<2x128xf32>
    %101 = arith.addf %100, %99 : vector<2x128xf32>
    %102 = arith.divf %100, %101 : vector<2x128xf32>
    %103 = math.tanh %97 : vector<2x128xf32>
    %c96_i32_39 = arith.constant 96 : i32
    %104 = tpu.dynamic_rotate %102 by %c96_i32_39 dim 1 : vector<2x128xf32>, i32 -> vector<2x128xf32>
    %c64_i32_40 = arith.constant 64 : i32
    %105 = tpu.dynamic_rotate %103 by %c64_i32_40 dim 1 : vector<2x128xf32>, i32 -> vector<2x128xf32>
    %c32_i32_41 = arith.constant 32 : i32
    %106 = tpu.dynamic_rotate %102 by %c32_i32_41 dim 1 : vector<2x128xf32>, i32 -> vector<2x128xf32>
    %107 = arith.mulf %104, %67 : vector<2x128xf32>
    %108 = arith.mulf %102, %105 : vector<2x128xf32>
    %109 = arith.addf %107, %108 : vector<2x128xf32>
    %110 = math.tanh %109 : vector<2x128xf32>
    %111 = arith.mulf %106, %110 : vector<2x128xf32>
    %112 = arith.negf %111 : vector<2x128xf32>
    %113 = math.exp %112 : vector<2x128xf32>
    %cst_42 = arith.constant 1.000000e+00 : f32
    %114 = vector.broadcast %cst_42 : f32 to vector<2x128xf32>
    %115 = arith.addf %114, %113 : vector<2x128xf32>
    %116 = arith.divf %114, %115 : vector<2x128xf32>
    %117 = arith.mulf %111, %116 : vector<2x128xf32>
    %118 = tpu.concatenate %117, %93 in 1 : vector<2x128xf32>, vector<2x128xf32> -> vector<2x256xf32>
    %c0_43 = arith.constant 0 : index
    %c0_44 = arith.constant 0 : index
    %119 = vector.load %arg4[%c0_43, %c0_44] : memref<256x128xf32, #tpu.memory_space<vmem>>, vector<256x128xf32>
    %cst_45 = arith.constant dense<0.000000e+00> : vector<2x128xf32>
    %120 = tpu.matmul %118, %119, %cst_45 {dimension_numbers = #tpu.dot_dimension_numbers<[1], [0], [0], [1], [0, 0, 1, 1], [], []>} : vector<2x256xf32>, vector<256x128xf32>, vector<2x128xf32> -> vector<2x128xf32>
    %121 = arith.addf %120, %8 : vector<2x128xf32>
    %122 = arith.negf %121 : vector<2x128xf32>
    %123 = math.exp %122 : vector<2x128xf32>
    %cst_46 = arith.constant 1.000000e+00 : f32
    %124 = vector.broadcast %cst_46 : f32 to vector<2x128xf32>
    %125 = arith.addf %124, %123 : vector<2x128xf32>
    %126 = arith.divf %124, %125 : vector<2x128xf32>
    %127 = math.tanh %121 : vector<2x128xf32>
    %c96_i32_47 = arith.constant 96 : i32
    %128 = tpu.dynamic_rotate %126 by %c96_i32_47 dim 1 : vector<2x128xf32>, i32 -> vector<2x128xf32>
    %c64_i32_48 = arith.constant 64 : i32
    %129 = tpu.dynamic_rotate %127 by %c64_i32_48 dim 1 : vector<2x128xf32>, i32 -> vector<2x128xf32>
    %c32_i32_49 = arith.constant 32 : i32
    %130 = tpu.dynamic_rotate %126 by %c32_i32_49 dim 1 : vector<2x128xf32>, i32 -> vector<2x128xf32>
    %131 = arith.mulf %128, %91 : vector<2x128xf32>
    %132 = arith.mulf %126, %129 : vector<2x128xf32>
    %133 = arith.addf %131, %132 : vector<2x128xf32>
    %134 = math.tanh %133 : vector<2x128xf32>
    %135 = arith.mulf %130, %134 : vector<2x128xf32>
    %136 = vector.extract_strided_slice %5 {offsets = [6, 0], sizes = [2, 128], strides = [1, 1]} : vector<16x128xf32> to vector<2x128xf32>
    %c0_50 = arith.constant 0 : index
    %c0_51 = arith.constant 0 : index
    %137 = vector.load %arg3[%c0_50, %c0_51] : memref<128x128xf32, #tpu.memory_space<vmem>>, vector<128x128xf32>
    %cst_52 = arith.constant dense<0.000000e+00> : vector<2x128xf32>
    %138 = tpu.matmul %111, %137, %cst_52 {dimension_numbers = #tpu.dot_dimension_numbers<[1], [0], [0], [1], [0, 0, 1, 1], [], []>} : vector<2x128xf32>, vector<128x128xf32>, vector<2x128xf32> -> vector<2x128xf32>
    %139 = arith.addf %136, %138 : vector<2x128xf32>
    %140 = arith.negf %139 : vector<2x128xf32>
    %141 = math.exp %140 : vector<2x128xf32>
    %cst_53 = arith.constant 1.000000e+00 : f32
    %142 = vector.broadcast %cst_53 : f32 to vector<2x128xf32>
    %143 = arith.addf %142, %141 : vector<2x128xf32>
    %144 = arith.divf %142, %143 : vector<2x128xf32>
    %145 = math.tanh %139 : vector<2x128xf32>
    %c96_i32_54 = arith.constant 96 : i32
    %146 = tpu.dynamic_rotate %144 by %c96_i32_54 dim 1 : vector<2x128xf32>, i32 -> vector<2x128xf32>
    %c64_i32_55 = arith.constant 64 : i32
    %147 = tpu.dynamic_rotate %145 by %c64_i32_55 dim 1 : vector<2x128xf32>, i32 -> vector<2x128xf32>
    %c32_i32_56 = arith.constant 32 : i32
    %148 = tpu.dynamic_rotate %144 by %c32_i32_56 dim 1 : vector<2x128xf32>, i32 -> vector<2x128xf32>
    %149 = arith.mulf %146, %109 : vector<2x128xf32>
    %150 = arith.mulf %144, %147 : vector<2x128xf32>
    %151 = arith.addf %149, %150 : vector<2x128xf32>
    %152 = math.tanh %151 : vector<2x128xf32>
    %153 = arith.mulf %148, %152 : vector<2x128xf32>
    %154 = arith.negf %153 : vector<2x128xf32>
    %155 = math.exp %154 : vector<2x128xf32>
    %cst_57 = arith.constant 1.000000e+00 : f32
    %156 = vector.broadcast %cst_57 : f32 to vector<2x128xf32>
    %157 = arith.addf %156, %155 : vector<2x128xf32>
    %158 = arith.divf %156, %157 : vector<2x128xf32>
    %159 = arith.mulf %153, %158 : vector<2x128xf32>
    %160 = tpu.concatenate %159, %135 in 1 : vector<2x128xf32>, vector<2x128xf32> -> vector<2x256xf32>
    %c0_58 = arith.constant 0 : index
    %c0_59 = arith.constant 0 : index
    %161 = vector.load %arg4[%c0_58, %c0_59] : memref<256x128xf32, #tpu.memory_space<vmem>>, vector<256x128xf32>
    %cst_60 = arith.constant dense<0.000000e+00> : vector<2x128xf32>
    %162 = tpu.matmul %160, %161, %cst_60 {dimension_numbers = #tpu.dot_dimension_numbers<[1], [0], [0], [1], [0, 0, 1, 1], [], []>} : vector<2x256xf32>, vector<256x128xf32>, vector<2x128xf32> -> vector<2x128xf32>
    %163 = arith.addf %162, %8 : vector<2x128xf32>
    %164 = arith.negf %163 : vector<2x128xf32>
    %165 = math.exp %164 : vector<2x128xf32>
    %cst_61 = arith.constant 1.000000e+00 : f32
    %166 = vector.broadcast %cst_61 : f32 to vector<2x128xf32>
    %167 = arith.addf %166, %165 : vector<2x128xf32>
    %168 = arith.divf %166, %167 : vector<2x128xf32>
    %169 = math.tanh %163 : vector<2x128xf32>
    %c96_i32_62 = arith.constant 96 : i32
    %170 = tpu.dynamic_rotate %168 by %c96_i32_62 dim 1 : vector<2x128xf32>, i32 -> vector<2x128xf32>
    %c64_i32_63 = arith.constant 64 : i32
    %171 = tpu.dynamic_rotate %169 by %c64_i32_63 dim 1 : vector<2x128xf32>, i32 -> vector<2x128xf32>
    %c32_i32_64 = arith.constant 32 : i32
    %172 = tpu.dynamic_rotate %168 by %c32_i32_64 dim 1 : vector<2x128xf32>, i32 -> vector<2x128xf32>
    %173 = arith.mulf %170, %133 : vector<2x128xf32>
    %174 = arith.mulf %168, %171 : vector<2x128xf32>
    %175 = arith.addf %173, %174 : vector<2x128xf32>
    %176 = math.tanh %175 : vector<2x128xf32>
    %177 = arith.mulf %172, %176 : vector<2x128xf32>
    %178 = vector.extract_strided_slice %5 {offsets = [8, 0], sizes = [2, 128], strides = [1, 1]} : vector<16x128xf32> to vector<2x128xf32>
    %c0_65 = arith.constant 0 : index
    %c0_66 = arith.constant 0 : index
    %179 = vector.load %arg3[%c0_65, %c0_66] : memref<128x128xf32, #tpu.memory_space<vmem>>, vector<128x128xf32>
    %cst_67 = arith.constant dense<0.000000e+00> : vector<2x128xf32>
    %180 = tpu.matmul %153, %179, %cst_67 {dimension_numbers = #tpu.dot_dimension_numbers<[1], [0], [0], [1], [0, 0, 1, 1], [], []>} : vector<2x128xf32>, vector<128x128xf32>, vector<2x128xf32> -> vector<2x128xf32>
    %181 = arith.addf %178, %180 : vector<2x128xf32>
    %182 = arith.negf %181 : vector<2x128xf32>
    %183 = math.exp %182 : vector<2x128xf32>
    %cst_68 = arith.constant 1.000000e+00 : f32
    %184 = vector.broadcast %cst_68 : f32 to vector<2x128xf32>
    %185 = arith.addf %184, %183 : vector<2x128xf32>
    %186 = arith.divf %184, %185 : vector<2x128xf32>
    %187 = math.tanh %181 : vector<2x128xf32>
    %c96_i32_69 = arith.constant 96 : i32
    %188 = tpu.dynamic_rotate %186 by %c96_i32_69 dim 1 : vector<2x128xf32>, i32 -> vector<2x128xf32>
    %c64_i32_70 = arith.constant 64 : i32
    %189 = tpu.dynamic_rotate %187 by %c64_i32_70 dim 1 : vector<2x128xf32>, i32 -> vector<2x128xf32>
    %c32_i32_71 = arith.constant 32 : i32
    %190 = tpu.dynamic_rotate %186 by %c32_i32_71 dim 1 : vector<2x128xf32>, i32 -> vector<2x128xf32>
    %191 = arith.mulf %188, %151 : vector<2x128xf32>
    %192 = arith.mulf %186, %189 : vector<2x128xf32>
    %193 = arith.addf %191, %192 : vector<2x128xf32>
    %194 = math.tanh %193 : vector<2x128xf32>
    %195 = arith.mulf %190, %194 : vector<2x128xf32>
    %196 = arith.negf %195 : vector<2x128xf32>
    %197 = math.exp %196 : vector<2x128xf32>
    %cst_72 = arith.constant 1.000000e+00 : f32
    %198 = vector.broadcast %cst_72 : f32 to vector<2x128xf32>
    %199 = arith.addf %198, %197 : vector<2x128xf32>
    %200 = arith.divf %198, %199 : vector<2x128xf32>
    %201 = arith.mulf %195, %200 : vector<2x128xf32>
    %202 = tpu.concatenate %201, %177 in 1 : vector<2x128xf32>, vector<2x128xf32> -> vector<2x256xf32>
    %c0_73 = arith.constant 0 : index
    %c0_74 = arith.constant 0 : index
    %203 = vector.load %arg4[%c0_73, %c0_74] : memref<256x128xf32, #tpu.memory_space<vmem>>, vector<256x128xf32>
    %cst_75 = arith.constant dense<0.000000e+00> : vector<2x128xf32>
    %204 = tpu.matmul %202, %203, %cst_75 {dimension_numbers = #tpu.dot_dimension_numbers<[1], [0], [0], [1], [0, 0, 1, 1], [], []>} : vector<2x256xf32>, vector<256x128xf32>, vector<2x128xf32> -> vector<2x128xf32>
    %205 = arith.addf %204, %8 : vector<2x128xf32>
    %206 = arith.negf %205 : vector<2x128xf32>
    %207 = math.exp %206 : vector<2x128xf32>
    %cst_76 = arith.constant 1.000000e+00 : f32
    %208 = vector.broadcast %cst_76 : f32 to vector<2x128xf32>
    %209 = arith.addf %208, %207 : vector<2x128xf32>
    %210 = arith.divf %208, %209 : vector<2x128xf32>
    %211 = math.tanh %205 : vector<2x128xf32>
    %c96_i32_77 = arith.constant 96 : i32
    %212 = tpu.dynamic_rotate %210 by %c96_i32_77 dim 1 : vector<2x128xf32>, i32 -> vector<2x128xf32>
    %c64_i32_78 = arith.constant 64 : i32
    %213 = tpu.dynamic_rotate %211 by %c64_i32_78 dim 1 : vector<2x128xf32>, i32 -> vector<2x128xf32>
    %c32_i32_79 = arith.constant 32 : i32
    %214 = tpu.dynamic_rotate %210 by %c32_i32_79 dim 1 : vector<2x128xf32>, i32 -> vector<2x128xf32>
    %215 = arith.mulf %212, %175 : vector<2x128xf32>
    %216 = arith.mulf %210, %213 : vector<2x128xf32>
    %217 = arith.addf %215, %216 : vector<2x128xf32>
    %218 = math.tanh %217 : vector<2x128xf32>
    %219 = arith.mulf %214, %218 : vector<2x128xf32>
    %220 = vector.extract_strided_slice %5 {offsets = [10, 0], sizes = [2, 128], strides = [1, 1]} : vector<16x128xf32> to vector<2x128xf32>
    %c0_80 = arith.constant 0 : index
    %c0_81 = arith.constant 0 : index
    %221 = vector.load %arg3[%c0_80, %c0_81] : memref<128x128xf32, #tpu.memory_space<vmem>>, vector<128x128xf32>
    %cst_82 = arith.constant dense<0.000000e+00> : vector<2x128xf32>
    %222 = tpu.matmul %195, %221, %cst_82 {dimension_numbers = #tpu.dot_dimension_numbers<[1], [0], [0], [1], [0, 0, 1, 1], [], []>} : vector<2x128xf32>, vector<128x128xf32>, vector<2x128xf32> -> vector<2x128xf32>
    %223 = arith.addf %220, %222 : vector<2x128xf32>
    %224 = arith.negf %223 : vector<2x128xf32>
    %225 = math.exp %224 : vector<2x128xf32>
    %cst_83 = arith.constant 1.000000e+00 : f32
    %226 = vector.broadcast %cst_83 : f32 to vector<2x128xf32>
    %227 = arith.addf %226, %225 : vector<2x128xf32>
    %228 = arith.divf %226, %227 : vector<2x128xf32>
    %229 = math.tanh %223 : vector<2x128xf32>
    %c96_i32_84 = arith.constant 96 : i32
    %230 = tpu.dynamic_rotate %228 by %c96_i32_84 dim 1 : vector<2x128xf32>, i32 -> vector<2x128xf32>
    %c64_i32_85 = arith.constant 64 : i32
    %231 = tpu.dynamic_rotate %229 by %c64_i32_85 dim 1 : vector<2x128xf32>, i32 -> vector<2x128xf32>
    %c32_i32_86 = arith.constant 32 : i32
    %232 = tpu.dynamic_rotate %228 by %c32_i32_86 dim 1 : vector<2x128xf32>, i32 -> vector<2x128xf32>
    %233 = arith.mulf %230, %193 : vector<2x128xf32>
    %234 = arith.mulf %228, %231 : vector<2x128xf32>
    %235 = arith.addf %233, %234 : vector<2x128xf32>
    %236 = math.tanh %235 : vector<2x128xf32>
    %237 = arith.mulf %232, %236 : vector<2x128xf32>
    %238 = arith.negf %237 : vector<2x128xf32>
    %239 = math.exp %238 : vector<2x128xf32>
    %cst_87 = arith.constant 1.000000e+00 : f32
    %240 = vector.broadcast %cst_87 : f32 to vector<2x128xf32>
    %241 = arith.addf %240, %239 : vector<2x128xf32>
    %242 = arith.divf %240, %241 : vector<2x128xf32>
    %243 = arith.mulf %237, %242 : vector<2x128xf32>
    %244 = tpu.concatenate %243, %219 in 1 : vector<2x128xf32>, vector<2x128xf32> -> vector<2x256xf32>
    %c0_88 = arith.constant 0 : index
    %c0_89 = arith.constant 0 : index
    %245 = vector.load %arg4[%c0_88, %c0_89] : memref<256x128xf32, #tpu.memory_space<vmem>>, vector<256x128xf32>
    %cst_90 = arith.constant dense<0.000000e+00> : vector<2x128xf32>
    %246 = tpu.matmul %244, %245, %cst_90 {dimension_numbers = #tpu.dot_dimension_numbers<[1], [0], [0], [1], [0, 0, 1, 1], [], []>} : vector<2x256xf32>, vector<256x128xf32>, vector<2x128xf32> -> vector<2x128xf32>
    %247 = arith.addf %246, %8 : vector<2x128xf32>
    %248 = arith.negf %247 : vector<2x128xf32>
    %249 = math.exp %248 : vector<2x128xf32>
    %cst_91 = arith.constant 1.000000e+00 : f32
    %250 = vector.broadcast %cst_91 : f32 to vector<2x128xf32>
    %251 = arith.addf %250, %249 : vector<2x128xf32>
    %252 = arith.divf %250, %251 : vector<2x128xf32>
    %253 = math.tanh %247 : vector<2x128xf32>
    %c96_i32_92 = arith.constant 96 : i32
    %254 = tpu.dynamic_rotate %252 by %c96_i32_92 dim 1 : vector<2x128xf32>, i32 -> vector<2x128xf32>
    %c64_i32_93 = arith.constant 64 : i32
    %255 = tpu.dynamic_rotate %253 by %c64_i32_93 dim 1 : vector<2x128xf32>, i32 -> vector<2x128xf32>
    %c32_i32_94 = arith.constant 32 : i32
    %256 = tpu.dynamic_rotate %252 by %c32_i32_94 dim 1 : vector<2x128xf32>, i32 -> vector<2x128xf32>
    %257 = arith.mulf %254, %217 : vector<2x128xf32>
    %258 = arith.mulf %252, %255 : vector<2x128xf32>
    %259 = arith.addf %257, %258 : vector<2x128xf32>
    %260 = math.tanh %259 : vector<2x128xf32>
    %261 = arith.mulf %256, %260 : vector<2x128xf32>
    %262 = vector.extract_strided_slice %5 {offsets = [12, 0], sizes = [2, 128], strides = [1, 1]} : vector<16x128xf32> to vector<2x128xf32>
    %c0_95 = arith.constant 0 : index
    %c0_96 = arith.constant 0 : index
    %263 = vector.load %arg3[%c0_95, %c0_96] : memref<128x128xf32, #tpu.memory_space<vmem>>, vector<128x128xf32>
    %cst_97 = arith.constant dense<0.000000e+00> : vector<2x128xf32>
    %264 = tpu.matmul %237, %263, %cst_97 {dimension_numbers = #tpu.dot_dimension_numbers<[1], [0], [0], [1], [0, 0, 1, 1], [], []>} : vector<2x128xf32>, vector<128x128xf32>, vector<2x128xf32> -> vector<2x128xf32>
    %265 = arith.addf %262, %264 : vector<2x128xf32>
    %266 = arith.negf %265 : vector<2x128xf32>
    %267 = math.exp %266 : vector<2x128xf32>
    %cst_98 = arith.constant 1.000000e+00 : f32
    %268 = vector.broadcast %cst_98 : f32 to vector<2x128xf32>
    %269 = arith.addf %268, %267 : vector<2x128xf32>
    %270 = arith.divf %268, %269 : vector<2x128xf32>
    %271 = math.tanh %265 : vector<2x128xf32>
    %c96_i32_99 = arith.constant 96 : i32
    %272 = tpu.dynamic_rotate %270 by %c96_i32_99 dim 1 : vector<2x128xf32>, i32 -> vector<2x128xf32>
    %c64_i32_100 = arith.constant 64 : i32
    %273 = tpu.dynamic_rotate %271 by %c64_i32_100 dim 1 : vector<2x128xf32>, i32 -> vector<2x128xf32>
    %c32_i32_101 = arith.constant 32 : i32
    %274 = tpu.dynamic_rotate %270 by %c32_i32_101 dim 1 : vector<2x128xf32>, i32 -> vector<2x128xf32>
    %275 = arith.mulf %272, %235 : vector<2x128xf32>
    %276 = arith.mulf %270, %273 : vector<2x128xf32>
    %277 = arith.addf %275, %276 : vector<2x128xf32>
    %278 = math.tanh %277 : vector<2x128xf32>
    %279 = arith.mulf %274, %278 : vector<2x128xf32>
    %280 = arith.negf %279 : vector<2x128xf32>
    %281 = math.exp %280 : vector<2x128xf32>
    %cst_102 = arith.constant 1.000000e+00 : f32
    %282 = vector.broadcast %cst_102 : f32 to vector<2x128xf32>
    %283 = arith.addf %282, %281 : vector<2x128xf32>
    %284 = arith.divf %282, %283 : vector<2x128xf32>
    %285 = arith.mulf %279, %284 : vector<2x128xf32>
    %286 = tpu.concatenate %285, %261 in 1 : vector<2x128xf32>, vector<2x128xf32> -> vector<2x256xf32>
    %c0_103 = arith.constant 0 : index
    %c0_104 = arith.constant 0 : index
    %287 = vector.load %arg4[%c0_103, %c0_104] : memref<256x128xf32, #tpu.memory_space<vmem>>, vector<256x128xf32>
    %cst_105 = arith.constant dense<0.000000e+00> : vector<2x128xf32>
    %288 = tpu.matmul %286, %287, %cst_105 {dimension_numbers = #tpu.dot_dimension_numbers<[1], [0], [0], [1], [0, 0, 1, 1], [], []>} : vector<2x256xf32>, vector<256x128xf32>, vector<2x128xf32> -> vector<2x128xf32>
    %289 = arith.addf %288, %8 : vector<2x128xf32>
    %290 = arith.negf %289 : vector<2x128xf32>
    %291 = math.exp %290 : vector<2x128xf32>
    %cst_106 = arith.constant 1.000000e+00 : f32
    %292 = vector.broadcast %cst_106 : f32 to vector<2x128xf32>
    %293 = arith.addf %292, %291 : vector<2x128xf32>
    %294 = arith.divf %292, %293 : vector<2x128xf32>
    %295 = math.tanh %289 : vector<2x128xf32>
    %c96_i32_107 = arith.constant 96 : i32
    %296 = tpu.dynamic_rotate %294 by %c96_i32_107 dim 1 : vector<2x128xf32>, i32 -> vector<2x128xf32>
    %c64_i32_108 = arith.constant 64 : i32
    %297 = tpu.dynamic_rotate %295 by %c64_i32_108 dim 1 : vector<2x128xf32>, i32 -> vector<2x128xf32>
    %c32_i32_109 = arith.constant 32 : i32
    %298 = tpu.dynamic_rotate %294 by %c32_i32_109 dim 1 : vector<2x128xf32>, i32 -> vector<2x128xf32>
    %299 = arith.mulf %296, %259 : vector<2x128xf32>
    %300 = arith.mulf %294, %297 : vector<2x128xf32>
    %301 = arith.addf %299, %300 : vector<2x128xf32>
    %302 = math.tanh %301 : vector<2x128xf32>
    %303 = arith.mulf %298, %302 : vector<2x128xf32>
    %304 = vector.extract_strided_slice %5 {offsets = [14, 0], sizes = [2, 128], strides = [1, 1]} : vector<16x128xf32> to vector<2x128xf32>
    %c0_110 = arith.constant 0 : index
    %c0_111 = arith.constant 0 : index
    %305 = vector.load %arg3[%c0_110, %c0_111] : memref<128x128xf32, #tpu.memory_space<vmem>>, vector<128x128xf32>
    %cst_112 = arith.constant dense<0.000000e+00> : vector<2x128xf32>
    %306 = tpu.matmul %279, %305, %cst_112 {dimension_numbers = #tpu.dot_dimension_numbers<[1], [0], [0], [1], [0, 0, 1, 1], [], []>} : vector<2x128xf32>, vector<128x128xf32>, vector<2x128xf32> -> vector<2x128xf32>
    %307 = arith.addf %304, %306 : vector<2x128xf32>
    %308 = arith.negf %307 : vector<2x128xf32>
    %309 = math.exp %308 : vector<2x128xf32>
    %cst_113 = arith.constant 1.000000e+00 : f32
    %310 = vector.broadcast %cst_113 : f32 to vector<2x128xf32>
    %311 = arith.addf %310, %309 : vector<2x128xf32>
    %312 = arith.divf %310, %311 : vector<2x128xf32>
    %313 = math.tanh %307 : vector<2x128xf32>
    %c96_i32_114 = arith.constant 96 : i32
    %314 = tpu.dynamic_rotate %312 by %c96_i32_114 dim 1 : vector<2x128xf32>, i32 -> vector<2x128xf32>
    %c64_i32_115 = arith.constant 64 : i32
    %315 = tpu.dynamic_rotate %313 by %c64_i32_115 dim 1 : vector<2x128xf32>, i32 -> vector<2x128xf32>
    %c32_i32_116 = arith.constant 32 : i32
    %316 = tpu.dynamic_rotate %312 by %c32_i32_116 dim 1 : vector<2x128xf32>, i32 -> vector<2x128xf32>
    %317 = arith.mulf %314, %277 : vector<2x128xf32>
    %318 = arith.mulf %312, %315 : vector<2x128xf32>
    %319 = arith.addf %317, %318 : vector<2x128xf32>
    %320 = math.tanh %319 : vector<2x128xf32>
    %321 = arith.mulf %316, %320 : vector<2x128xf32>
    %322 = arith.negf %321 : vector<2x128xf32>
    %323 = math.exp %322 : vector<2x128xf32>
    %cst_117 = arith.constant 1.000000e+00 : f32
    %324 = vector.broadcast %cst_117 : f32 to vector<2x128xf32>
    %325 = arith.addf %324, %323 : vector<2x128xf32>
    %326 = arith.divf %324, %325 : vector<2x128xf32>
    %327 = arith.mulf %321, %326 : vector<2x128xf32>
    %328 = tpu.concatenate %327, %303 in 1 : vector<2x128xf32>, vector<2x128xf32> -> vector<2x256xf32>
    %c0_118 = arith.constant 0 : index
    %c0_119 = arith.constant 0 : index
    %329 = vector.load %arg4[%c0_118, %c0_119] : memref<256x128xf32, #tpu.memory_space<vmem>>, vector<256x128xf32>
    %cst_120 = arith.constant dense<0.000000e+00> : vector<2x128xf32>
    %330 = tpu.matmul %328, %329, %cst_120 {dimension_numbers = #tpu.dot_dimension_numbers<[1], [0], [0], [1], [0, 0, 1, 1], [], []>} : vector<2x256xf32>, vector<256x128xf32>, vector<2x128xf32> -> vector<2x128xf32>
    %331 = arith.addf %330, %8 : vector<2x128xf32>
    %332 = arith.negf %331 : vector<2x128xf32>
    %333 = math.exp %332 : vector<2x128xf32>
    %cst_121 = arith.constant 1.000000e+00 : f32
    %334 = vector.broadcast %cst_121 : f32 to vector<2x128xf32>
    %335 = arith.addf %334, %333 : vector<2x128xf32>
    %336 = arith.divf %334, %335 : vector<2x128xf32>
    %337 = math.tanh %331 : vector<2x128xf32>
    %c96_i32_122 = arith.constant 96 : i32
    %338 = tpu.dynamic_rotate %336 by %c96_i32_122 dim 1 : vector<2x128xf32>, i32 -> vector<2x128xf32>
    %c64_i32_123 = arith.constant 64 : i32
    %339 = tpu.dynamic_rotate %337 by %c64_i32_123 dim 1 : vector<2x128xf32>, i32 -> vector<2x128xf32>
    %c32_i32_124 = arith.constant 32 : i32
    %340 = tpu.dynamic_rotate %336 by %c32_i32_124 dim 1 : vector<2x128xf32>, i32 -> vector<2x128xf32>
    %341 = arith.mulf %338, %301 : vector<2x128xf32>
    %342 = arith.mulf %336, %339 : vector<2x128xf32>
    %343 = arith.addf %341, %342 : vector<2x128xf32>
    %344 = math.tanh %343 : vector<2x128xf32>
    %345 = arith.mulf %340, %344 : vector<2x128xf32>
    %346 = vector.extract_strided_slice %345 {offsets = [0, 0], sizes = [2, 32], strides = [1, 1]} : vector<2x128xf32> to vector<2x32xf32>
    %cst_125 = arith.constant dense<0.000000e+00> : vector<2xf32>
    %347 = vector.multi_reduction <add>, %346, %cst_125 [1] : vector<2x32xf32> to vector<2xf32>
    %348 = vector.shape_cast %347 : vector<2xf32> to vector<2x1xf32>
    %cst_126 = arith.constant 3.200000e+01 : f32
    %349 = vector.broadcast %cst_126 : f32 to vector<2x1xf32>
    %350 = arith.divf %348, %349 : vector<2x1xf32>
    %351 = vector.broadcast %350 : vector<2x1xf32> to vector<2x32xf32>
    %352 = arith.subf %346, %351 : vector<2x32xf32>
    %353 = arith.mulf %352, %352 : vector<2x32xf32>
    %cst_127 = arith.constant dense<0.000000e+00> : vector<2xf32>
    %354 = vector.multi_reduction <add>, %353, %cst_127 [1] : vector<2x32xf32> to vector<2xf32>
    %355 = vector.shape_cast %354 : vector<2xf32> to vector<2x1xf32>
    %cst_128 = arith.constant 3.200000e+01 : f32
    %356 = vector.broadcast %cst_128 : f32 to vector<2x1xf32>
    %357 = arith.divf %355, %356 : vector<2x1xf32>
    %358 = vector.broadcast %350 : vector<2x1xf32> to vector<2x32xf32>
    %359 = arith.subf %346, %358 : vector<2x32xf32>
    %cst_129 = arith.constant 9.99999974E-6 : f32
    %360 = vector.broadcast %cst_129 : f32 to vector<2x1xf32>
    %361 = arith.addf %357, %360 : vector<2x1xf32>
    %362 = math.rsqrt %361 : vector<2x1xf32>
    %363 = vector.broadcast %362 : vector<2x1xf32> to vector<2x32xf32>
    %364 = arith.mulf %359, %363 : vector<2x32xf32>
    %c0_130 = arith.constant 0 : index
    %c0_131 = arith.constant 0 : index
    %365 = vector.load %arg6[%c0_130, %c0_131] : memref<1x32xf32, #tpu.memory_space<vmem>>, vector<1x32xf32>
    %366 = vector.broadcast %365 : vector<1x32xf32> to vector<2x32xf32>
    %367 = arith.mulf %364, %366 : vector<2x32xf32>
    %c0_132 = arith.constant 0 : index
    %c0_133 = arith.constant 0 : index
    %368 = vector.load %arg7[%c0_132, %c0_133] : memref<1x32xf32, #tpu.memory_space<vmem>>, vector<1x32xf32>
    %369 = vector.broadcast %368 : vector<1x32xf32> to vector<2x32xf32>
    %370 = arith.addf %367, %369 : vector<2x32xf32>
    %c0_134 = arith.constant 0 : index
    %c0_135 = arith.constant 0 : index
    %371 = vector.load %arg8[%c0_134, %c0_135] : memref<32x5xf32, #tpu.memory_space<vmem>>, vector<32x5xf32>
    %cst_136 = arith.constant dense<0.000000e+00> : vector<2x5xf32>
    %372 = tpu.matmul %370, %371, %cst_136 {dimension_numbers = #tpu.dot_dimension_numbers<[1], [0], [0], [1], [0, 0, 1, 1], [], []>} : vector<2x32xf32>, vector<32x5xf32>, vector<2x5xf32> -> vector<2x5xf32>
    %c0_137 = arith.constant 0 : index
    %c0_138 = arith.constant 0 : index
    %373 = vector.load %arg9[%c0_137, %c0_138] : memref<1x5xf32, #tpu.memory_space<vmem>>, vector<1x5xf32>
    %374 = vector.broadcast %373 : vector<1x5xf32> to vector<2x5xf32>
    %375 = arith.addf %372, %374 : vector<2x5xf32>
    %c0_139 = arith.constant 0 : index
    %c0_140 = arith.constant 0 : index
    %376 = vector.load %arg10[%c0_139, %c0_140] : memref<2x5xf32, #tpu.memory_space<vmem>>, vector<2x5xf32>
    tpu.vector_store %arg10[%c0_139, %c0_140], %375 {strides = array<i32>} : memref<2x5xf32, #tpu.memory_space<vmem>>, vector<2x5xf32>,
    return
  }
}

</mosaic_0001>

<bundles_post_ra>
// kernel: lstm_classifier.1
= control target key start
LH: loop header
LB: loop body
LE: loop exit
PB: predicated region body
PF: predicated region fallthrough
CT: control target
= control target key end

     0   :  { %v4139_v1 = vmov 0.0   ;;  %vm2873_vm0 = vmmov 0   ;;  %vm47_vm1 = vcmask 130048   ;;  %s4128_s0 = inlined_call_operand.vmem [shape: f32[16,16], index: 0, kind: input, shape index: {}]   ;;  %s4129_s1 = inlined_call_operand.vmem [shape: f32[16,128], index: 1, kind: input, shape index: {}]   ;;  %s4130_s2 = inlined_call_operand.vmem [shape: f32[1,128], index: 2, kind: input, shape index: {}]   ;;  %s4131_s3 = inlined_call_operand.vmem [shape: f32[128,128], index: 3, kind: input, shape index: {}]   ;;  %s4132_s4 = inlined_call_operand.vmem [shape: f32[256,128], index: 4, kind: input, shape index: {}]   ;;  %s4133_s5 = inlined_call_operand.vmem [shape: f32[1,128], index: 5, kind: input, shape index: {}]   ;;  %s4134_s6 = inlined_call_operand.vmem [shape: f32[1,32], index: 6, kind: input, shape index: {}]   ;;  %s4135_s7 = inlined_call_operand.vmem [shape: f32[1,32], index: 7, kind: input, shape index: {}]   ;;  %s4136_s8 = inlined_call_operand.vmem [shape: f32[32,5], index: 8, kind: input, shape index: {}]   ;;  %s4137_s9 = inlined_call_operand.vmem [shape: f32[1,5], index: 9, kind: input, shape index: {}]   ;;  %s4138_s10 = inlined_call_operand.hbm [shape: f32[2,5], index: 10, kind: output, shape index: {}]  }
   0x1   :  { %v2936_v0 = vld [vmem:[%s4131_s3 + $0x78] sm:$0xff]  ;;  %2342 = vmatprep.subr.mxu1 %v4139_v1  ;;  %v2942_v2 = vld [vmem:[%s4131_s3 + $0x70] sm:$0xff]  ;;  %2374 = vmatprep.mubr.msk.f32.mxu1 %vm2873_vm0, %v4139_v1  ;;  %v2951_v3 = vld [vmem:[%s4131_s3 + $0x68] sm:$0xff] }
   0x2   :  { %2343 = vmatpush3.msra.mxu1 %v2936_v0  ;;  %v39_v4 = vld [vmem:[%s4129_s1 + $0x8] sm:$0xff]  ;;  %v38_v5 = vld [vmem:[%s4129_s1] sm:$0xff] }
   0x3   :  { %2344 = vmatprep.subr.mxu1 %v4139_v1  ;;  %2335 = vmatprep.subr.mxu0 %v39_v4  ;;  %v2964_v6 = vld [vmem:[%s4131_s3 + $0x60] sm:$0xff]  ;;  %v37_v8 = vld [vmem:[%s4128_s0 + $0x8] sm:$0xff] }
   0x4   :  { %2345 = vmatpush3.msra.mxu1 %v2942_v2  ;;  %2336 = vmatpush3.msra.mxu0 %v39_v4  ;;  %v36_v7 = vld [vmem:[%s4128_s0] sm:$0xff] }
   0x5   :  { %2346 = vmatprep.subr.mxu1 %v4139_v1  ;;  %2337 = vmatprep.subr.mxu0 %v38_v5 }
   0x6   :  { %2347 = vmatpush3.msra.mxu1 %v2951_v3 }
   0x7   :  { %15 = vsyncpa [#allocation3], 0  ;;  %2348 = vmatprep.subr.mxu1 %v4139_v1  ;;  %v2977_v9 = vld [vmem:[%s4131_s3 + $0x58] sm:$0xff]  ;;  %2338 = vmatpush3.msra.mxu0 %v38_v5  ;;  %v2984_v10 = vld [vmem:[%s4131_s3 + $0x50] sm:$0xff]  ;;  %s2874_s0 = smov 32   ;;  %s2876_s12 = smov 64  }
   0x8   :  { %2349 = vmatpush3.msra.mxu1 %v2964_v6  ;;  %2339 = vmatprep.mubr.msk.f32.mxu0 %vm47_vm1, %v36_v7  ;;  %v2992_v11 = vld [vmem:[%s4131_s3 + $0x48] sm:$0xff]  ;;  %v2999_v12 = vld [vmem:[%s4131_s3 + $0x40] sm:$0xff]  ;;  %v3006_v13 = vld [vmem:[%s4131_s3 + $0x38] sm:$0xff]  ;;  %vm1746_vm2 = vcmask 254976   ;;  %vm1788_vm3 = vcmask 261120   ;;  %s2877_s21 = smov [#allocation2]  }
   0x9   :  { %2350 = vmatprep.subr.mxu1 %v4139_v1  ;;  %2340 = vmatmul.mubr.msk.f32.vlgmr.msra.gmra.mxu0 %vm47_vm1, %v37_v8  ;;  %v3013_v14 = vld [vmem:[%s4131_s3 + $0x30] sm:$0xff]  ;;  %v3020_v15 = vld [vmem:[%s4131_s3 + $0x28] sm:$0xff]  ;;  %v3027_v16 = vld [vmem:[%s4131_s3 + $0x20] sm:$0xff]  ;;  %s1870_s22 = sshll.u32 %s2877_s21, 4  ;;  %vm1862_vm4 = vcmask 33792   ;;  %s1871_s22 = int_to_ptr.vmem [resolvable:$true] %s1870_s22 }
   0xa   :  { %2351 = vmatpush3.msra.mxu1 %v2977_v9  ;;  %344 = vmatprep.mubr.f32.mxu0 %v4139_v1  ;;  %v3034_v17 = vld [vmem:[%s4131_s3 + $0x18] sm:$0xff]  ;;  %v3041_v18 = vld [vmem:[%s4131_s3 + $0x10] sm:$0xff]  ;;  %v3048_v19 = vld [vmem:[%s4131_s3 + $0x8] sm:$0xff]  ;;  %p2855_p1 = scmp.lt.s32.totalorder %s1871_s22, %s1871_s22 }
   0xb   :  { %2352 = vmatprep.subr.mxu1 %v4139_v1  ;;  %v3055_v20 = vld [vmem:[%s4131_s3] sm:$0xff]  ;;  %v3114_v34 = vld [vmem:[%s4132_s4 + $0xf8] sm:$0xff]  ;;  %v3126_v36 = vld [vmem:[%s4132_s4 + $0xf0] sm:$0xff] }
   0xc   :  { %2353 = vmatpush3.msra.mxu1 %v2984_v10  ;;  %v1878_v21 = vld [vmem:[%s4130_s2] ss:$0 sm:$0xff]  ;;  %s2875_s2 = smov 96   ;;  %4150 = vst [vmem:[#allocation6_spill] sm:$0xff] %v3114_v34  ;;  %1931 = vmatprep.subr.mxu0 %v3114_v34  ;;  %v3120_v35 = vld [vmem:[%s4132_s4 + $0x78] sm:$0xff]  ;;  %v3132_v37 = vld [vmem:[%s4132_s4 + $0x70] sm:$0xff] }
   0xd   :  { %2354 = vmatprep.subr.mxu1 %v4139_v1  ;;  %1932 = vmatpush3.msra.mxu0 %v3120_v35  ;;  %v3138_v38 = vld [vmem:[%s4132_s4 + $0xe8] sm:$0xff]  ;;  %v3150_v40 = vld [vmem:[%s4132_s4 + $0xe0] sm:$0xff]  ;;  %v3162_v42 = vld [vmem:[%s4132_s4 + $0xd8] sm:$0xff] }
   0xe   :  { %2355 = vmatpush3.msra.mxu1 %v2992_v11  ;;  %1933 = vmatprep.subr.mxu0 %v3126_v36  ;;  %v3144_v39 = vld [vmem:[%s4132_s4 + $0x68] sm:$0xff]  ;;  %v3156_v41 = vld [vmem:[%s4132_s4 + $0x60] sm:$0xff]  ;;  %v3168_v43 = vld [vmem:[%s4132_s4 + $0x58] sm:$0xff] }
   0xf   :  { %2356 = vmatprep.subr.mxu1 %v4139_v1  ;;  %1934 = vmatpush3.msra.mxu0 %v3132_v37  ;;  %v3174_v44 = vld [vmem:[%s4132_s4 + $0xd0] sm:$0xff]  ;;  %v3186_v46 = vld [vmem:[%s4132_s4 + $0xc8] sm:$0xff]  ;;  %v3198_v48 = vld [vmem:[%s4132_s4 + $0xc0] sm:$0xff] }
  0x10   :  { %2357 = vmatpush3.msra.mxu1 %v2999_v12  ;;  %1935 = vmatprep.subr.mxu0 %v3138_v38  ;;  %v3180_v45 = vld [vmem:[%s4132_s4 + $0x50] sm:$0xff]  ;;  %v3192_v47 = vld [vmem:[%s4132_s4 + $0x48] sm:$0xff]  ;;  %v3204_v49 = vld [vmem:[%s4132_s4 + $0x40] sm:$0xff] }
  0x11   :  { %2358 = vmatprep.subr.mxu1 %v4139_v1  ;;  %1936 = vmatpush3.msra.mxu0 %v3144_v39  ;;  %v3210_v50 = vld [vmem:[%s4132_s4 + $0xb8] sm:$0xff]  ;;  %v3221_v52 = vld [vmem:[%s4132_s4 + $0xb0] sm:$0xff]  ;;  %v3232_v54 = vld [vmem:[%s4132_s4 + $0xa8] sm:$0xff] }
  0x12   :  { %2359 = vmatpush3.msra.mxu1 %v3006_v13  ;;  %1937 = vmatprep.subr.mxu0 %v3150_v40  ;;  %v3216_v51 = vld [vmem:[%s4132_s4 + $0x38] sm:$0xff]  ;;  %v3226_v53 = vld [vmem:[%s4132_s4 + $0x30] sm:$0xff]  ;;  %v3238_v55 = vld [vmem:[%s4132_s4 + $0x28] sm:$0xff] }
  0x13   :  { %2360 = vmatprep.subr.mxu1 %v4139_v1  ;;  %1938 = vmatpush3.msra.mxu0 %v3156_v41  ;;  %v3244_v56 = vld [vmem:[%s4132_s4 + $0xa0] sm:$0xff]  ;;  %v3256_v58 = vld [vmem:[%s4132_s4 + $0x98] sm:$0xff]  ;;  %v3268_v60 = vld [vmem:[%s4132_s4 + $0x90] sm:$0xff] }
  0x14   :  { %2361 = vmatpush3.msra.mxu1 %v3013_v14  ;;  %1939 = vmatprep.subr.mxu0 %v3162_v42  ;;  %v3250_v57 = vld [vmem:[%s4132_s4 + $0x20] sm:$0xff]  ;;  %v3262_v59 = vld [vmem:[%s4132_s4 + $0x18] sm:$0xff]  ;;  %v3274_v61 = vld [vmem:[%s4132_s4 + $0x10] sm:$0xff] }
  0x15   :  { %2362 = vmatprep.subr.mxu1 %v4139_v1  ;;  %1940 = vmatpush3.msra.mxu0 %v3168_v43  ;;  %v3280_v62 = vld [vmem:[%s4132_s4 + $0x88] sm:$0xff]  ;;  %v3292_v4 = vld [vmem:[%s4132_s4 + $0x80] sm:$0xff] }
  0x16   :  { %2363 = vmatpush3.msra.mxu1 %v3020_v15  ;;  %1941 = vmatprep.subr.mxu0 %v3174_v44  ;;  %v3286_v63 = vld [vmem:[%s4132_s4 + $0x8] sm:$0xff]  ;;  %v3298_v5 = vld [vmem:[%s4132_s4] sm:$0xff] }
  0x17   :  { %2364 = vmatprep.subr.mxu1 %v4139_v1  ;;  %1942 = vmatpush3.msra.mxu0 %v3180_v45  ;;  %4151 = vst [vmem:[#allocation7_spill] sm:$0xff] %v3298_v5 }
  0x18   :  { %2365 = vmatpush3.msra.mxu1 %v3027_v16  ;;  %1943 = vmatprep.subr.mxu0 %v3186_v46 }
  0x19   :  { %2366 = vmatprep.subr.mxu1 %v4139_v1  ;;  %1944 = vmatpush3.msra.mxu0 %v3192_v47 }
  0x1a   :  { %2367 = vmatpush3.msra.mxu1 %v3034_v17  ;;  %1945 = vmatprep.subr.mxu0 %v3198_v48 }
  0x1b   :  { %2368 = vmatprep.subr.mxu1 %v4139_v1  ;;  %1946 = vmatpush3.msra.mxu0 %v3204_v49 }
  0x1c   :  { %2369 = vmatpush3.msra.mxu1 %v3041_v18  ;;  %1947 = vmatprep.subr.mxu0 %v3210_v50 }
  0x1d   :  { %2370 = vmatprep.subr.mxu1 %v4139_v1  ;;  %1948 = vmatpush3.msra.mxu0 %v3216_v51 }
  0x1e   :  { %2371 = vmatpush3.msra.mxu1 %v3048_v19  ;;  %1949 = vmatprep.subr.mxu0 %v3221_v52 }
  0x1f   :  { %2372 = vmatprep.subr.mxu1 %v4139_v1  ;;  %1950 = vmatpush3.msra.mxu0 %v3226_v53 }
  0x20   :  { %2373 = vmatpush3.msra.mxu1 %v3055_v20  ;;  %1951 = vmatprep.subr.mxu0 %v3232_v54 }
  0x21   :  { %2375 = vmatmul.mubr.f32.vlgmr.msra.gmra.mxu1 %v4139_v1  ;;  %2377 = vmatprep.subr.mxu1 %v4139_v1 }
  0x22   :  { %2378 = vmatpush3.msra.mxu1 %v2936_v0  ;;  %2409 = vmatprep.mubr.msk.f32.mxu1 %vm2873_vm0, %v4139_v1 }
  0x23   :  { %2379 = vmatprep.subr.mxu1 %v4139_v1  ;;  %1952 = vmatpush3.msra.mxu0 %v3238_v55 }
  0x24   :  { %2380 = vmatpush3.msra.mxu1 %v2942_v2  ;;  %1953 = vmatprep.subr.mxu0 %v3244_v56 }
  0x25   :  { %2381 = vmatprep.subr.mxu1 %v4139_v1  ;;  %1954 = vmatpush3.msra.mxu0 %v3250_v57 }
  0x26   :  { %2382 = vmatpush3.msra.mxu1 %v2951_v3  ;;  %1955 = vmatprep.subr.mxu0 %v3256_v58 }
  0x27   :  { %2383 = vmatprep.subr.mxu1 %v4139_v1  ;;  %1956 = vmatpush3.msra.mxu0 %v3262_v59 }
  0x28   :  { %2384 = vmatpush3.msra.mxu1 %v2964_v6  ;;  %1957 = vmatprep.subr.mxu0 %v3268_v60 }
  0x29   :  { %2385 = vmatprep.subr.mxu1 %v4139_v1  ;;  %1958 = vmatpush3.msra.mxu0 %v3274_v61 }
  0x2a   :  { %2386 = vmatpush3.msra.mxu1 %v2977_v9  ;;  %1959 = vmatprep.subr.mxu0 %v3280_v62 }
  0x2b   :  { %2387 = vmatprep.subr.mxu1 %v4139_v1  ;;  %1960 = vmatpush3.msra.mxu0 %v3286_v63 }
  0x2c   :  { %2388 = vmatpush3.msra.mxu1 %v2984_v10  ;;  %1961 = vmatprep.subr.mxu0 %v3292_v4 }
  0x2d   :  { %2389 = vmatprep.subr.mxu1 %v4139_v1  ;;  %1962 = vmatpush3.msra.mxu0 %v3298_v5 }
  0x2e   :  { %2390 = vmatpush3.msra.mxu1 %v2992_v11  ;;  %1983 = vmatprep.subr.mxu0 %v3114_v34 }
  0x2f   :  { %2391 = vmatprep.subr.mxu1 %v4139_v1 }
  0x30   :  { %2392 = vmatpush3.msra.mxu1 %v2999_v12 }
  0x31   :  { %2393 = vmatprep.subr.mxu1 %v4139_v1 }
  0x32   :  { %2394 = vmatpush3.msra.mxu1 %v3006_v13 }
  0x33   :  { %2395 = vmatprep.subr.mxu1 %v4139_v1 }
  0x34   :  { %2396 = vmatpush3.msra.mxu1 %v3013_v14 }
  0x35   :  { %2397 = vmatprep.subr.mxu1 %v4139_v1 }
  0x36   :  { %2398 = vmatpush3.msra.mxu1 %v3020_v15 }
  0x37   :  { %2399 = vmatprep.subr.mxu1 %v4139_v1 }
  0x38   :  { %2400 = vmatpush3.msra.mxu1 %v3027_v16 }
  0x39   :  { %2401 = vmatprep.subr.mxu1 %v4139_v1 }
  0x3a   :  { %2402 = vmatpush3.msra.mxu1 %v3034_v17 }
  0x3b   :  { %2403 = vmatprep.subr.mxu1 %v4139_v1 }
  0x3c   :  { %2404 = vmatpush3.msra.mxu1 %v3041_v18 }
  0x3d   :  { %2405 = vmatprep.subr.mxu1 %v4139_v1 }
  0x3e   :  { %2406 = vmatpush3.msra.mxu1 %v3048_v19 }
  0x3f   :  { %2407 = vmatprep.subr.mxu1 %v4139_v1 }
  0x40   :  { %2408 = vmatpush3.msra.mxu1 %v3055_v20 }
  0x41   :  { %2412 = vmatprep.subr.mxu1 %v4139_v1 }
  0xc9   :  { %v2341_v22 = vpop.f32.mrf.mxu0 }
  0xca   :  { %v3099_v23 = vadd.f32 %v2341_v22, %v1878_v21 }
  0xcb   :  { %v120_v24 = vpop.f32.mrf.mxu0 }
  0xcc   :  { %4149 = vst [vmem:[#allocation5_spill] sm:$0xff] %v3099_v23  ;;  %v3101_v25 = vadd.f32 %v1878_v21, %v120_v24 }
  0xe1   :  { %v218_v26 = vpop.f32.mrf.mxu1 }
  0xe2   :  { %v222_v27 = vadd.f32 %v218_v26, %v3101_v25 }
  0xe3   :  { %v2376_v28 = vpop.f32.mrf.mxu1 }
  0xe4   :  { %v1882_v29 = vmul.f32 -1.442695, %v222_v27 }
  0xe6   :  { %2639 = vpow2.f32 %v1882_v29 }
  0xf3   :  { %v2640_v30 = vpop.eup %2639 }
  0xf4   :  { %v226_v31 = vadd.f32 1.0, %v2640_v30 }
  0xf6   :  { %2641 = vrcp.f32 %v226_v31 }
  0xf7   :  { %2643 = vtanh.f32 %v222_v27 }
 0x103   :  { %v3104_v32 = vpop.eup %2641 }
 0x104   :  { %234 = vrot.lane.b32.xlu1 %v3104_v32, %s2874_s0  ;;  %230 = vrot.lane.b32.xlu0 %v3104_v32, %s2875_s2  ;;  %v2644_v33 = vpop.eup %2643 }
 0x108   :  { %232 = vrot.lane.b32.xlu0 %v2644_v33, %s2876_s12 }
 0x176   :  { %v231_v7 = vpop.permute.xlu0 %230  ;;  %v235_v27 = vpop.permute.xlu1 %234 }
 0x177   :  { %v236_v21 = vmul.f32 0.0, %v231_v7 }
 0x17a   :  { %v233_v8 = vpop.permute.xlu0 %232 }
 0x17b   :  { %v237_v22 = vmul.f32 %v3104_v32, %v233_v8 }
 0x17d   :  { %v3305_v24 = vadd.f32 %v237_v22, %v236_v21 }
 0x17f   :  { %2645 = vtanh.f32 %v3305_v24 }
 0x18c   :  { %v2646_v26 = vpop.eup %2645 }
 0x18d   :  { %v240_v28 = vmul.f32 %v2646_v26, %v235_v27 }
 0x18f   :  { %v1883_v29 = vmul.f32 -1.442695, %v240_v28  ;;  %2410 = vmatmul.mubr.f32.vlgmr.msra.gmra.mxu1 %v240_v28 }
 0x190   :  { %2413 = vmatpush3.msra.mxu1 %v2936_v0  ;;  %2444 = vmatprep.mubr.msk.f32.mxu1 %vm2873_vm0, %v4139_v1 }
 0x191   :  { %2647 = vpow2.f32 %v1883_v29  ;;  %2414 = vmatprep.subr.mxu1 %v4139_v1 }
 0x192   :  { %2415 = vmatpush3.msra.mxu1 %v2942_v2 }
 0x193   :  { %2416 = vmatprep.subr.mxu1 %v4139_v1 }
 0x194   :  { %2417 = vmatpush3.msra.mxu1 %v2951_v3 }
 0x195   :  { %2418 = vmatprep.subr.mxu1 %v4139_v1 }
 0x196   :  { %2419 = vmatpush3.msra.mxu1 %v2964_v6 }
 0x197   :  { %2420 = vmatprep.subr.mxu1 %v4139_v1 }
 0x198   :  { %2421 = vmatpush3.msra.mxu1 %v2977_v9 }
 0x199   :  { %2422 = vmatprep.subr.mxu1 %v4139_v1 }
 0x19a   :  { %2423 = vmatpush3.msra.mxu1 %v2984_v10 }
 0x19b   :  { %2424 = vmatprep.subr.mxu1 %v4139_v1 }
 0x19c   :  { %2425 = vmatpush3.msra.mxu1 %v2992_v11 }
 0x19d   :  { %2426 = vmatprep.subr.mxu1 %v4139_v1 }
 0x19e   :  { %v2648_v30 = vpop.eup %2647  ;;  %2427 = vmatpush3.msra.mxu1 %v2999_v12 }
 0x19f   :  { %v244_v31 = vadd.f32 1.0, %v2648_v30  ;;  %2428 = vmatprep.subr.mxu1 %v4139_v1 }
 0x1a0   :  { %2429 = vmatpush3.msra.mxu1 %v3006_v13 }
 0x1a1   :  { %2649 = vrcp.f32 %v244_v31  ;;  %2430 = vmatprep.subr.mxu1 %v4139_v1 }
 0x1a2   :  { %2431 = vmatpush3.msra.mxu1 %v3013_v14 }
 0x1a3   :  { %2432 = vmatprep.subr.mxu1 %v4139_v1 }
 0x1a4   :  { %2433 = vmatpush3.msra.mxu1 %v3020_v15 }
 0x1a5   :  { %2434 = vmatprep.subr.mxu1 %v4139_v1 }
 0x1a6   :  { %2435 = vmatpush3.msra.mxu1 %v3027_v16 }
 0x1a7   :  { %2436 = vmatprep.subr.mxu1 %v4139_v1 }
 0x1a8   :  { %2437 = vmatpush3.msra.mxu1 %v3034_v17 }
 0x1a9   :  { %2438 = vmatprep.subr.mxu1 %v4139_v1 }
 0x1aa   :  { %2439 = vmatpush3.msra.mxu1 %v3041_v18 }
 0x1ab   :  { %2440 = vmatprep.subr.mxu1 %v4139_v1 }
 0x1ac   :  { %2441 = vmatpush3.msra.mxu1 %v3048_v19 }
 0x1ad   :  { %2442 = vmatprep.subr.mxu1 %v4139_v1 }
 0x1ae   :  { %v2650_v32 = vpop.eup %2649  ;;  %2443 = vmatpush3.msra.mxu1 %v3055_v20 }
 0x1af   :  { %v247_v33 = vmul.f32 %v2650_v32, %v240_v28  ;;  %2447 = vmatprep.subr.mxu1 %v4139_v1 }
 0x1b1   :  { %345 = vmatmul.mubr.f32.vlgmr.msra.gmra.mxu0 %v247_v33  ;;  %v3379_v33 = vld [vmem:[%s4133_s5] ss:$0 sm:$0xff] }
 0x1b2   :  { %1984 = vmatpush3.msra.mxu0 %v3120_v35  ;;  %4152 = vst [vmem:[#allocation8_spill] sm:$0xff] %v3379_v33 }
 0x1b3   :  { %1985 = vmatprep.subr.mxu0 %v3126_v36 }
 0x1b4   :  { %1986 = vmatpush3.msra.mxu0 %v3132_v37 }
 0x1b5   :  { %1987 = vmatprep.subr.mxu0 %v3138_v38 }
 0x1b6   :  { %1988 = vmatpush3.msra.mxu0 %v3144_v39 }
 0x1b7   :  { %1989 = vmatprep.subr.mxu0 %v3150_v40 }
 0x1b8   :  { %1990 = vmatpush3.msra.mxu0 %v3156_v41 }
 0x1b9   :  { %1991 = vmatprep.subr.mxu0 %v3162_v42 }
 0x1ba   :  { %1992 = vmatpush3.msra.mxu0 %v3168_v43 }
 0x1bb   :  { %1993 = vmatprep.subr.mxu0 %v3174_v44 }
 0x1bc   :  { %1994 = vmatpush3.msra.mxu0 %v3180_v45 }
 0x1bd   :  { %1995 = vmatprep.subr.mxu0 %v3186_v46 }
 0x1be   :  { %1996 = vmatpush3.msra.mxu0 %v3192_v47 }
 0x1bf   :  { %1997 = vmatprep.subr.mxu0 %v3198_v48 }
 0x1c0   :  { %1998 = vmatpush3.msra.mxu0 %v3204_v49 }
 0x1c1   :  { %1999 = vmatprep.subr.mxu0 %v3210_v50 }
 0x1c2   :  { %2000 = vmatpush3.msra.mxu0 %v3216_v51 }
 0x1c3   :  { %2001 = vmatprep.subr.mxu0 %v3221_v52 }
 0x1c4   :  { %2002 = vmatpush3.msra.mxu0 %v3226_v53 }
 0x1c5   :  { %2003 = vmatprep.subr.mxu0 %v3232_v54 }
 0x1c6   :  { %2004 = vmatpush3.msra.mxu0 %v3238_v55 }
 0x1c7   :  { %2005 = vmatprep.subr.mxu0 %v3244_v56 }
 0x1c8   :  { %2006 = vmatpush3.msra.mxu0 %v3250_v57 }
 0x1c9   :  { %2007 = vmatprep.subr.mxu0 %v3256_v58 }
 0x1ca   :  { %2008 = vmatpush3.msra.mxu0 %v3262_v59 }
 0x1cb   :  { %2009 = vmatprep.subr.mxu0 %v3268_v60 }
 0x1cc   :  { %2010 = vmatpush3.msra.mxu0 %v3274_v61 }
 0x1cd   :  { %2011 = vmatprep.subr.mxu0 %v3280_v62 }
 0x1ce   :  { %2012 = vmatpush3.msra.mxu0 %v3286_v63 }
 0x1cf   :  { %2013 = vmatprep.subr.mxu0 %v3292_v4 }
 0x1d0   :  { %2014 = vmatpush3.msra.mxu0 %v3298_v5 }
 0x1d1   :  { %2035 = vmatprep.subr.mxu0 %v3114_v34 }
 0x24f   :  { %v434_v7 = vpop.f32.mrf.mxu1 }
 0x250   :  { %v439_v8 = vrot.slane %v434_v7, 6 }
 0x251   :  { %v2411_v21 = vpop.f32.mrf.mxu1 }
 0x252   :  { %v441_v22 = vadd.f32 %v439_v8, %v3101_v25 }
 0x254   :  { %v1885_v26 = vmul.f32 -1.442695, %v441_v22  ;;  %2651 = vtanh.f32 %v441_v22 }
 0x256   :  { %2653 = vpow2.f32 %v1885_v26 }
 0x261   :  { %v2652_v27 = vpop.eup %2651 }
 0x262   :  { %v455_v28 = vrot.slane %v2652_v27, 2 }
 0x263   :  { %v2654_v29 = vpop.eup %2653 }
 0x264   :  { %v445_v30 = vadd.f32 1.0, %v2654_v29  ;;  %457 = vrot.lane.b32.xlu1 %v455_v28, %s2876_s12 }
 0x266   :  { %2655 = vrcp.f32 %v445_v30 }
 0x271   :  { %v1963_v31 = vpop.f32.mrf.mxu0 }
 0x273   :  { %v2656_v32 = vpop.eup %2655  ;;  %v1964_v7 = vpop.f32.mrf.mxu0 }
 0x274   :  { %v1965_v21 = vadd.f32 %v1964_v7, %v1963_v31  ;;  %v450_v8 = vrot.slane %v2656_v32, 2 }
 0x276   :  { %v347_v22 = vadd.f32 %v1965_v21, %v3379_v33  ;;  %459 = vrot.lane.b32.xlu1 %v450_v8, %s2874_s0  ;;  %452 = vrot.lane.b32.xlu0 %v450_v8, %s2875_s2  ;;  %v4153_v33 = vmov 0.0  }
 0x278   :  { %v1884_v26 = vmul.f32 -1.442695, %v347_v22  ;;  %2657 = vtanh.f32 %v347_v22 }
 0x27a   :  { %2659 = vpow2.f32 %v1884_v26 }
 0x285   :  { %v2658_v27 = vpop.eup %2657 }
 0x286   :  { %359 = vrot.lane.b32.xlu1 %v2658_v27, %s2876_s12 }
 0x287   :  { %v2660_v28 = vpop.eup %2659 }
 0x288   :  { %v353_v29 = vadd.f32 1.0, %v2660_v28 }
 0x28a   :  { %2661 = vrcp.f32 %v353_v29 }
 0x297   :  { %v2662_v30 = vpop.eup %2661 }
 0x298   :  { %357 = vrot.lane.b32.xlu0 %v2662_v30, %s2875_s2 }
 0x29c   :  { %361 = vrot.lane.b32.xlu0 %v2662_v30, %s2874_s0 }
 0x2d6   :  { %v458_v31 = vpop.permute.xlu1 %457 }
 0x2d7   :  { %v463_v7 = vrot.slane %v458_v31, 6 }
 0x2d9   :  { %v465_v21 = vmul.f32 %v2656_v32, %v463_v7 }
 0x2db   :  { %v467_v23 = vrot.slane %v465_v21, 2 }
 0x2e8   :  { %v453_v1 = vpop.permute.xlu0 %452  ;;  %v460_v27 = vpop.permute.xlu1 %459 }
 0x2e9   :  { %v461_v8 = vmul.f32 %v453_v1, %v3305_v24 }
 0x2eb   :  { %v3388_v22 = vadd.f32 %v467_v23, %v461_v8 }
 0x2ed   :  { %2663 = vtanh.f32 %v3388_v22 }
 0x2f8   :  { %v360_v1 = vpop.permute.xlu1 %359 }
 0x2f9   :  { %v364_v24 = vmul.f32 %v2662_v30, %v360_v1 }
 0x2fa   :  { %v2664_v26 = vpop.eup %2663 }
 0x2fb   :  { %v471_v28 = vmul.f32 %v2664_v26, %v460_v27 }
 0x2fd   :  { %v1886_v29 = vmul.f32 -1.442695, %v471_v28  ;;  %2445 = vmatmul.mubr.f32.vlgmr.msra.gmra.mxu1 %v471_v28 }
 0x2fe   :  { %2448 = vmatpush3.msra.mxu1 %v2936_v0  ;;  %2479 = vmatprep.mubr.msk.f32.mxu1 %vm2873_vm0, %v4153_v33 }
 0x2ff   :  { %2665 = vpow2.f32 %v1886_v29  ;;  %2449 = vmatprep.subr.mxu1 %v4153_v33 }
 0x300   :  { %2450 = vmatpush3.msra.mxu1 %v2942_v2 }
 0x301   :  { %2451 = vmatprep.subr.mxu1 %v4153_v33 }
 0x302   :  { %2452 = vmatpush3.msra.mxu1 %v2951_v3 }
 0x303   :  { %2453 = vmatprep.subr.mxu1 %v4153_v33 }
 0x304   :  { %2454 = vmatpush3.msra.mxu1 %v2964_v6 }
 0x305   :  { %2455 = vmatprep.subr.mxu1 %v4153_v33 }
 0x306   :  { %2456 = vmatpush3.msra.mxu1 %v2977_v9 }
 0x307   :  { %2457 = vmatprep.subr.mxu1 %v4153_v33 }
 0x308   :  { %2458 = vmatpush3.msra.mxu1 %v2984_v10 }
 0x309   :  { %2459 = vmatprep.subr.mxu1 %v4153_v33 }
 0x30a   :  { %v358_v23 = vpop.permute.xlu0 %357  ;;  %2460 = vmatpush3.msra.mxu1 %v2992_v11 }
 0x30b   :  { %v363_v32 = vmul.f32 0.0, %v358_v23  ;;  %2461 = vmatprep.subr.mxu1 %v4153_v33 }
 0x30c   :  { %v2666_v31 = vpop.eup %2665  ;;  %2462 = vmatpush3.msra.mxu1 %v2999_v12 }
 0x30d   :  { %v475_v7 = vadd.f32 1.0, %v2666_v31  ;;  %v3408_v21 = vadd.f32 %v364_v24, %v363_v32  ;;  %2463 = vmatprep.subr.mxu1 %v4153_v33 }
 0x30e   :  { %2464 = vmatpush3.msra.mxu1 %v3006_v13  ;;  %v362_v26 = vpop.permute.xlu0 %361 }
 0x30f   :  { %2667 = vrcp.f32 %v475_v7  ;;  %2465 = vmatprep.subr.mxu1 %v4153_v33 }
 0x310   :  { %2669 = vtanh.f32 %v3408_v21  ;;  %2466 = vmatpush3.msra.mxu1 %v3013_v14 }
 0x311   :  { %2467 = vmatprep.subr.mxu1 %v4153_v33 }
 0x312   :  { %2468 = vmatpush3.msra.mxu1 %v3020_v15 }
 0x313   :  { %2469 = vmatprep.subr.mxu1 %v4153_v33 }
 0x314   :  { %2470 = vmatpush3.msra.mxu1 %v3027_v16 }
 0x315   :  { %2471 = vmatprep.subr.mxu1 %v4153_v33 }
 0x316   :  { %2472 = vmatpush3.msra.mxu1 %v3034_v17 }
 0x317   :  { %2473 = vmatprep.subr.mxu1 %v4153_v33 }
 0x318   :  { %2474 = vmatpush3.msra.mxu1 %v3041_v18 }
 0x319   :  { %2475 = vmatprep.subr.mxu1 %v4153_v33 }
 0x31a   :  { %2476 = vmatpush3.msra.mxu1 %v3048_v19 }
 0x31b   :  { %2477 = vmatprep.subr.mxu1 %v4153_v33 }
 0x31c   :  { %v2668_v30 = vpop.eup %2667  ;;  %2478 = vmatpush3.msra.mxu1 %v3055_v20 }
 0x31d   :  { %v2670_v8 = vpop.eup %2669  ;;  %v478_v27 = vmul.f32 %v2668_v30, %v471_v28  ;;  %2482 = vmatprep.subr.mxu1 %v4153_v33 }
 0x31e   :  { %v367_v29 = vmul.f32 %v2670_v8, %v362_v26 }
 0x320   :  { %543 = vmatprep.mubr.f32.mxu0 %v367_v29 }
 0x321   :  { %544 = vmatmul.mubr.f32.vlgmr.msra.gmra.mxu0 %v478_v27 }
 0x322   :  { %2036 = vmatpush3.msra.mxu0 %v3120_v35 }
 0x323   :  { %2037 = vmatprep.subr.mxu0 %v3126_v36 }
 0x324   :  { %2038 = vmatpush3.msra.mxu0 %v3132_v37 }
 0x325   :  { %2039 = vmatprep.subr.mxu0 %v3138_v38 }
 0x326   :  { %2040 = vmatpush3.msra.mxu0 %v3144_v39 }
 0x327   :  { %2041 = vmatprep.subr.mxu0 %v3150_v40 }
 0x328   :  { %2042 = vmatpush3.msra.mxu0 %v3156_v41 }
 0x329   :  { %2043 = vmatprep.subr.mxu0 %v3162_v42 }
 0x32a   :  { %2044 = vmatpush3.msra.mxu0 %v3168_v43 }
 0x32b   :  { %2045 = vmatprep.subr.mxu0 %v3174_v44 }
 0x32c   :  { %2046 = vmatpush3.msra.mxu0 %v3180_v45 }
 0x32d   :  { %2047 = vmatprep.subr.mxu0 %v3186_v46 }
 0x32e   :  { %2048 = vmatpush3.msra.mxu0 %v3192_v47 }
 0x32f   :  { %2049 = vmatprep.subr.mxu0 %v3198_v48 }
 0x330   :  { %2050 = vmatpush3.msra.mxu0 %v3204_v49 }
 0x331   :  { %2051 = vmatprep.subr.mxu0 %v3210_v50 }
 0x332   :  { %2052 = vmatpush3.msra.mxu0 %v3216_v51 }
 0x333   :  { %2053 = vmatprep.subr.mxu0 %v3221_v52 }
 0x334   :  { %2054 = vmatpush3.msra.mxu0 %v3226_v53 }
 0x335   :  { %2055 = vmatprep.subr.mxu0 %v3232_v54 }
 0x336   :  { %2056 = vmatpush3.msra.mxu0 %v3238_v55 }
 0x337   :  { %2057 = vmatprep.subr.mxu0 %v3244_v56 }
 0x338   :  { %2058 = vmatpush3.msra.mxu0 %v3250_v57 }
 0x339   :  { %2059 = vmatprep.subr.mxu0 %v3256_v58 }
 0x33a   :  { %2060 = vmatpush3.msra.mxu0 %v3262_v59 }
 0x33b   :  { %2061 = vmatprep.subr.mxu0 %v3268_v60 }
 0x33c   :  { %2062 = vmatpush3.msra.mxu0 %v3274_v61 }
 0x33d   :  { %2063 = vmatprep.subr.mxu0 %v3280_v62 }
 0x33e   :  { %2064 = vmatpush3.msra.mxu0 %v3286_v63 }
 0x33f   :  { %2065 = vmatprep.subr.mxu0 %v3292_v4 }
 0x340   :  { %2066 = vmatpush3.msra.mxu0 %v3298_v5 }
 0x341   :  { %2087 = vmatprep.subr.mxu0 %v3114_v34 }
 0x3bd   :  { %v633_v28 = vpop.f32.mrf.mxu1 }
 0x3be   :  { %v638_v1 = vrot.slane %v633_v28, 4  ;;  %v4154_v28 = vld [vmem:[#allocation8_spill] sm:$0xff] }
 0x3bf   :  { %v2446_v23 = vpop.f32.mrf.mxu1 }
 0x3c0   :  { %v640_v24 = vadd.f32 %v638_v1, %v3101_v25 }
 0x3c2   :  { %v1888_v32 = vmul.f32 -1.442695, %v640_v24  ;;  %2671 = vtanh.f32 %v640_v24 }
 0x3c4   :  { %2673 = vpow2.f32 %v1888_v32 }
 0x3cf   :  { %v2672_v31 = vpop.eup %2671 }
 0x3d0   :  { %v654_v7 = vrot.slane %v2672_v31, 4 }
 0x3d1   :  { %v2674_v30 = vpop.eup %2673 }
 0x3d2   :  { %v644_v8 = vadd.f32 1.0, %v2674_v30  ;;  %656 = vrot.lane.b32.xlu1 %v654_v7, %s2876_s12 }
 0x3d4   :  { %2675 = vrcp.f32 %v644_v8 }
 0x3e1   :  { %v2676_v26 = vpop.eup %2675  ;;  %v2015_v27 = vpop.f32.mrf.mxu0 }
 0x3e2   :  { %v649_v29 = vrot.slane %v2676_v26, 4 }
 0x3e3   :  { %v2016_v5 = vpop.f32.mrf.mxu0 }
 0x3e4   :  { %v2017_v34 = vadd.f32 %v2016_v5, %v2015_v27  ;;  %658 = vrot.lane.b32.xlu1 %v649_v29, %s2874_s0  ;;  %651 = vrot.lane.b32.xlu0 %v649_v29, %s2875_s2 }
 0x3e6   :  { %v546_v1 = vadd.f32 %v2017_v34, %v4154_v28 }
 0x3e8   :  { %v1887_v23 = vmul.f32 -1.442695, %v546_v1  ;;  %2677 = vtanh.f32 %v546_v1 }
 0x3ea   :  { %2679 = vpow2.f32 %v1887_v23 }
 0x3f5   :  { %v2678_v24 = vpop.eup %2677 }
 0x3f6   :  { %558 = vrot.lane.b32.xlu1 %v2678_v24, %s2876_s12 }
 0x3f7   :  { %v2680_v32 = vpop.eup %2679 }
 0x3f8   :  { %v552_v31 = vadd.f32 1.0, %v2680_v32 }
 0x3fa   :  { %2681 = vrcp.f32 %v552_v31 }
 0x407   :  { %v2682_v7 = vpop.eup %2681 }
 0x408   :  { %556 = vrot.lane.b32.xlu0 %v2682_v7, %s2875_s2 }
 0x40c   :  { %560 = vrot.lane.b32.xlu0 %v2682_v7, %s2874_s0 }
 0x444   :  { %v657_v5 = vpop.permute.xlu1 %656 }
 0x445   :  { %v662_v30 = vrot.slane %v657_v5, 4 }
 0x447   :  { %v664_v8 = vmul.f32 %v2676_v26, %v662_v30 }
 0x449   :  { %v666_v29 = vrot.slane %v664_v8, 4 }
 0x456   :  { %v652_v27 = vpop.permute.xlu0 %651  ;;  %v659_v24 = vpop.permute.xlu1 %658 }
 0x457   :  { %v660_v34 = vmul.f32 %v652_v27, %v3388_v22 }
 0x459   :  { %v3469_v1 = vadd.f32 %v666_v29, %v660_v34 }
 0x45b   :  { %2683 = vtanh.f32 %v3469_v1 }
 0x468   :  { %v2684_v23 = vpop.eup %2683 }
 0x469   :  { %v670_v32 = vmul.f32 %v2684_v23, %v659_v24 }
 0x46b   :  { %v1889_v31 = vmul.f32 -1.442695, %v670_v32  ;;  %2480 = vmatmul.mubr.f32.vlgmr.msra.gmra.mxu1 %v670_v32 }
 0x46c   :  { %2483 = vmatpush3.msra.mxu1 %v2936_v0  ;;  %2514 = vmatprep.mubr.msk.f32.mxu1 %vm2873_vm0, %v4153_v33  ;;  %v559_v0 = vpop.permute.xlu1 %558 }
 0x46d   :  { %2685 = vpow2.f32 %v1889_v31  ;;  %2484 = vmatprep.subr.mxu1 %v4153_v33 }
 0x46e   :  { %2485 = vmatpush3.msra.mxu1 %v2942_v2 }
 0x46f   :  { %2486 = vmatprep.subr.mxu1 %v4153_v33 }
 0x470   :  { %2487 = vmatpush3.msra.mxu1 %v2951_v3 }
 0x471   :  { %2488 = vmatprep.subr.mxu1 %v4153_v33 }
 0x472   :  { %2489 = vmatpush3.msra.mxu1 %v2964_v6  ;;  %v563_v6 = vmul.f32 %v2682_v7, %v559_v0 }
 0x473   :  { %2490 = vmatprep.subr.mxu1 %v4153_v33 }
 0x474   :  { %2491 = vmatpush3.msra.mxu1 %v2977_v9 }
 0x475   :  { %2492 = vmatprep.subr.mxu1 %v4153_v33 }
 0x476   :  { %2493 = vmatpush3.msra.mxu1 %v2984_v10 }
 0x477   :  { %2494 = vmatprep.subr.mxu1 %v4153_v33 }
 0x478   :  { %2495 = vmatpush3.msra.mxu1 %v2992_v11 }
 0x479   :  { %2496 = vmatprep.subr.mxu1 %v4153_v33 }
 0x47a   :  { %v2686_v2 = vpop.eup %2685  ;;  %v557_v3 = vpop.permute.xlu0 %556  ;;  %2497 = vmatpush3.msra.mxu1 %v2999_v12 }
 0x47b   :  { %v674_v22 = vadd.f32 1.0, %v2686_v2  ;;  %v562_v26 = vmul.f32 %v557_v3, %v3408_v21  ;;  %2498 = vmatprep.subr.mxu1 %v4153_v33 }
 0x47c   :  { %2499 = vmatpush3.msra.mxu1 %v3006_v13 }
 0x47d   :  { %v3492_v9 = vadd.f32 %v563_v6, %v562_v26  ;;  %2500 = vmatprep.subr.mxu1 %v4153_v33  ;;  %2687 = vrcp.f32 %v674_v22 }
 0x47e   :  { %2501 = vmatpush3.msra.mxu1 %v3013_v14  ;;  %v561_v12 = vpop.permute.xlu0 %560 }
 0x47f   :  { %2689 = vtanh.f32 %v3492_v9  ;;  %2502 = vmatprep.subr.mxu1 %v4153_v33 }
 0x480   :  { %2503 = vmatpush3.msra.mxu1 %v3020_v15  ;;  %v4155_v15 = vld [vmem:[#allocation7_spill] sm:$0xff] }
 0x481   :  { %2504 = vmatprep.subr.mxu1 %v4153_v33 }
 0x482   :  { %2505 = vmatpush3.msra.mxu1 %v3027_v16  ;;  %v4156_v16 = vld [vmem:[#allocation6_spill] sm:$0xff] }
 0x483   :  { %2506 = vmatprep.subr.mxu1 %v4153_v33 }
 0x484   :  { %2507 = vmatpush3.msra.mxu1 %v3034_v17 }
 0x485   :  { %2508 = vmatprep.subr.mxu1 %v4153_v33 }
 0x486   :  { %2509 = vmatpush3.msra.mxu1 %v3041_v18 }
 0x487   :  { %2510 = vmatprep.subr.mxu1 %v4153_v33 }
 0x488   :  { %2511 = vmatpush3.msra.mxu1 %v3048_v19 }
 0x489   :  { %2512 = vmatprep.subr.mxu1 %v4153_v33 }
 0x48a   :  { %2513 = vmatpush3.msra.mxu1 %v3055_v20  ;;  %v2688_v10 = vpop.eup %2687 }
 0x48b   :  { %2517 = vmatprep.subr.mxu1 %v4153_v33  ;;  %v677_v14 = vmul.f32 %v2688_v10, %v670_v32 }
 0x48c   :  { %v2690_v11 = vpop.eup %2689 }
 0x48d   :  { %v566_v13 = vmul.f32 %v2690_v11, %v561_v12 }
 0x48f   :  { %742 = vmatprep.mubr.f32.mxu0 %v566_v13 }
 0x490   :  { %743 = vmatmul.mubr.f32.vlgmr.msra.gmra.mxu0 %v677_v14 }
 0x491   :  { %2088 = vmatpush3.msra.mxu0 %v3120_v35 }
 0x492   :  { %2089 = vmatprep.subr.mxu0 %v3126_v36 }
 0x493   :  { %2090 = vmatpush3.msra.mxu0 %v3132_v37 }
 0x494   :  { %2091 = vmatprep.subr.mxu0 %v3138_v38 }
 0x495   :  { %2092 = vmatpush3.msra.mxu0 %v3144_v39 }
 0x496   :  { %2093 = vmatprep.subr.mxu0 %v3150_v40 }
 0x497   :  { %2094 = vmatpush3.msra.mxu0 %v3156_v41 }
 0x498   :  { %2095 = vmatprep.subr.mxu0 %v3162_v42 }
 0x499   :  { %2096 = vmatpush3.msra.mxu0 %v3168_v43 }
 0x49a   :  { %2097 = vmatprep.subr.mxu0 %v3174_v44 }
 0x49b   :  { %2098 = vmatpush3.msra.mxu0 %v3180_v45 }
 0x49c   :  { %2099 = vmatprep.subr.mxu0 %v3186_v46 }
 0x49d   :  { %2100 = vmatpush3.msra.mxu0 %v3192_v47 }
 0x49e   :  { %2101 = vmatprep.subr.mxu0 %v3198_v48 }
 0x49f   :  { %2102 = vmatpush3.msra.mxu0 %v3204_v49 }
 0x4a0   :  { %2103 = vmatprep.subr.mxu0 %v3210_v50 }
 0x4a1   :  { %2104 = vmatpush3.msra.mxu0 %v3216_v51 }
 0x4a2   :  { %2105 = vmatprep.subr.mxu0 %v3221_v52 }
 0x4a3   :  { %2106 = vmatpush3.msra.mxu0 %v3226_v53 }
 0x4a4   :  { %2107 = vmatprep.subr.mxu0 %v3232_v54 }
 0x4a5   :  { %2108 = vmatpush3.msra.mxu0 %v3238_v55 }
 0x4a6   :  { %2109 = vmatprep.subr.mxu0 %v3244_v56 }
 0x4a7   :  { %2110 = vmatpush3.msra.mxu0 %v3250_v57 }
 0x4a8   :  { %2111 = vmatprep.subr.mxu0 %v3256_v58 }
 0x4a9   :  { %2112 = vmatpush3.msra.mxu0 %v3262_v59 }
 0x4aa   :  { %2113 = vmatprep.subr.mxu0 %v3268_v60 }
 0x4ab   :  { %2114 = vmatpush3.msra.mxu0 %v3274_v61 }
 0x4ac   :  { %2115 = vmatprep.subr.mxu0 %v3280_v62 }
 0x4ad   :  { %2116 = vmatpush3.msra.mxu0 %v3286_v63 }
 0x4ae   :  { %2117 = vmatprep.subr.mxu0 %v3292_v4 }
 0x4af   :  { %2118 = vmatpush3.msra.mxu0 %v4155_v15 }
 0x4b0   :  { %2139 = vmatprep.subr.mxu0 %v4156_v16 }
 0x52b   :  { %v832_v17 = vpop.f32.mrf.mxu1 }
 0x52c   :  { %v837_v18 = vrot.slane %v832_v17, 2 }
 0x52d   :  { %v2481_v19 = vpop.f32.mrf.mxu1 }
 0x52e   :  { %v839_v20 = vadd.f32 %v837_v18, %v3101_v25  ;;  %v3561_v19 = vld [vmem:[%s4131_s3 + $0x78] sm:$0xff] }
 0x530   :  { %v1891_v21 = vmul.f32 -1.442695, %v839_v20  ;;  %2691 = vtanh.f32 %v839_v20  ;;  %v3577_v20 = vld [vmem:[%s4131_s3 + $0x68] sm:$0xff] }
 0x532   :  { %2693 = vpow2.f32 %v1891_v21  ;;  %v3584_v21 = vld [vmem:[%s4131_s3 + $0x60] sm:$0xff] }
 0x53d   :  { %v2692_v7 = vpop.eup %2691 }
 0x53e   :  { %v853_v5 = vrot.slane %v2692_v7, 6  ;;  %v3591_v7 = vld [vmem:[%s4131_s3 + $0x58] sm:$0xff] }
 0x53f   :  { %v2694_v30 = vpop.eup %2693 }
 0x540   :  { %v843_v8 = vadd.f32 1.0, %v2694_v30  ;;  %855 = vrot.lane.b32.xlu1 %v853_v5, %s2876_s12  ;;  %v3598_v5 = vld [vmem:[%s4131_s3 + $0x50] sm:$0xff]  ;;  %v3605_v30 = vld [vmem:[%s4131_s3 + $0x48] sm:$0xff] }
 0x542   :  { %2695 = vrcp.f32 %v843_v8 }
 0x54f   :  { %v2696_v27 = vpop.eup %2695 }
 0x550   :  { %v2067_v29 = vpop.f32.mrf.mxu0  ;;  %v848_v34 = vrot.slane %v2696_v27, 6 }
 0x552   :  { %v2068_v23 = vpop.f32.mrf.mxu0  ;;  %857 = vrot.lane.b32.xlu1 %v848_v34, %s2874_s0  ;;  %850 = vrot.lane.b32.xlu0 %v848_v34, %s2875_s2 }
 0x553   :  { %v2069_v24 = vadd.f32 %v2068_v23, %v2067_v29  ;;  %v3612_v29 = vld [vmem:[%s4131_s3 + $0x40] sm:$0xff] }
 0x555   :  { %v745_v25 = vadd.f32 %v2069_v24, %v4154_v28 }
 0x557   :  { %v1890_v32 = vmul.f32 -1.442695, %v745_v25  ;;  %2697 = vtanh.f32 %v745_v25 }
 0x559   :  { %2699 = vpow2.f32 %v1890_v32  ;;  %v3620_v32 = vld [vmem:[%s4131_s3 + $0x38] sm:$0xff] }
 0x564   :  { %v2698_v31 = vpop.eup %2697 }
 0x565   :  { %757 = vrot.lane.b32.xlu1 %v2698_v31, %s2876_s12 }
 0x566   :  { %v2700_v0 = vpop.eup %2699 }
 0x567   :  { %v751_v2 = vadd.f32 1.0, %v2700_v0  ;;  %v3629_v0 = vld [vmem:[%s4131_s3 + $0x30] sm:$0xff] }
 0x569   :  { %2701 = vrcp.f32 %v751_v2  ;;  %v3644_v2 = vld [vmem:[%s4131_s3 + $0x20] sm:$0xff] }
 0x576   :  { %v2702_v3 = vpop.eup %2701 }
 0x577   :  { %755 = vrot.lane.b32.xlu0 %v2702_v3, %s2875_s2 }
 0x57b   :  { %759 = vrot.lane.b32.xlu0 %v2702_v3, %s2874_s0 }
 0x5b2   :  { %v856_v6 = vpop.permute.xlu1 %855 }
 0x5b3   :  { %v861_v22 = vrot.slane %v856_v6, 2  ;;  %v3658_v6 = vld [vmem:[%s4131_s3 + $0x10] sm:$0xff] }
 0x5b5   :  { %v863_v26 = vmul.f32 %v2696_v27, %v861_v22  ;;  %v3665_v22 = vld [vmem:[%s4131_s3 + $0x8] sm:$0xff] }
 0x5b7   :  { %v865_v11 = vrot.slane %v863_v26, 6  ;;  %v3672_v26 = vld [vmem:[%s4131_s3] sm:$0xff] }
 0x5c4   :  { %v851_v10 = vpop.permute.xlu0 %850  ;;  %v858_v16 = vpop.permute.xlu1 %857 }
 0x5c5   :  { %v859_v12 = vmul.f32 %v851_v10, %v3469_v1  ;;  %v3570_v1 = vld [vmem:[%s4131_s3 + $0x70] sm:$0xff] }
 0x5c7   :  { %v3551_v13 = vadd.f32 %v865_v11, %v859_v12 }
 0x5c9   :  { %2703 = vtanh.f32 %v3551_v13 }
 0x5d6   :  { %v2704_v14 = vpop.eup %2703 }
 0x5d7   :  { %v3554_v17 = vmul.f32 %v2704_v14, %v858_v16  ;;  %v758_v8 = vpop.permute.xlu1 %757 }
 0x5d8   :  { %v762_v24 = vmul.f32 %v2702_v3, %v758_v8  ;;  %v3651_v3 = vld [vmem:[%s4131_s3 + $0x18] sm:$0xff] }
 0x5d9   :  { %v1892_v18 = vmul.f32 -1.442695, %v3554_v17  ;;  %2515 = vmatmul.mubr.f32.vlgmr.msra.gmra.mxu1 %v3554_v17 }
 0x5da   :  { %2518 = vmatpush3.msra.mxu1 %v3561_v19  ;;  %2549 = vmatprep.mubr.msk.f32.mxu1 %vm2873_vm0, %v4153_v33 }
 0x5db   :  { %2705 = vpow2.f32 %v1892_v18  ;;  %2519 = vmatprep.subr.mxu1 %v4153_v33 }
 0x5dc   :  { %2520 = vmatpush3.msra.mxu1 %v3570_v1 }
 0x5dd   :  { %2521 = vmatprep.subr.mxu1 %v4153_v33 }
 0x5de   :  { %2522 = vmatpush3.msra.mxu1 %v3577_v20 }
 0x5df   :  { %2523 = vmatprep.subr.mxu1 %v4153_v33 }
 0x5e0   :  { %2524 = vmatpush3.msra.mxu1 %v3584_v21 }
 0x5e1   :  { %2525 = vmatprep.subr.mxu1 %v4153_v33 }
 0x5e2   :  { %2526 = vmatpush3.msra.mxu1 %v3591_v7 }
 0x5e3   :  { %2527 = vmatprep.subr.mxu1 %v4153_v33 }
 0x5e4   :  { %2528 = vmatpush3.msra.mxu1 %v3598_v5 }
 0x5e5   :  { %2529 = vmatprep.subr.mxu1 %v4153_v33 }
 0x5e6   :  { %2530 = vmatpush3.msra.mxu1 %v3605_v30 }
 0x5e7   :  { %2531 = vmatprep.subr.mxu1 %v4153_v33 }
 0x5e8   :  { %v2706_v27 = vpop.eup %2705  ;;  %2532 = vmatpush3.msra.mxu1 %v3612_v29 }
 0x5e9   :  { %v873_v34 = vadd.f32 1.0, %v2706_v27  ;;  %v756_v23 = vpop.permute.xlu0 %755  ;;  %2533 = vmatprep.subr.mxu1 %v4153_v33 }
 0x5ea   :  { %v761_v25 = vmul.f32 %v756_v23, %v3492_v9  ;;  %2534 = vmatpush3.msra.mxu1 %v3620_v32  ;;  %v3637_v9 = vld [vmem:[%s4131_s3 + $0x28] sm:$0xff] }
 0x5eb   :  { %2535 = vmatprep.subr.mxu1 %v4153_v33  ;;  %2707 = vrcp.f32 %v873_v34 }
 0x5ec   :  { %v3624_v31 = vadd.f32 %v762_v24, %v761_v25  ;;  %2536 = vmatpush3.msra.mxu1 %v3629_v0 }
 0x5ed   :  { %2537 = vmatprep.subr.mxu1 %v4153_v33  ;;  %v760_v12 = vpop.permute.xlu0 %759 }
 0x5ee   :  { %2709 = vtanh.f32 %v3624_v31  ;;  %2538 = vmatpush3.msra.mxu1 %v3637_v9 }
 0x5ef   :  { %2539 = vmatprep.subr.mxu1 %v4153_v33 }
 0x5f0   :  { %2540 = vmatpush3.msra.mxu1 %v3644_v2 }
 0x5f1   :  { %2541 = vmatprep.subr.mxu1 %v4153_v33 }
 0x5f2   :  { %2542 = vmatpush3.msra.mxu1 %v3651_v3 }
 0x5f3   :  { %2543 = vmatprep.subr.mxu1 %v4153_v33 }
 0x5f4   :  { %2544 = vmatpush3.msra.mxu1 %v3658_v6 }
 0x5f5   :  { %2545 = vmatprep.subr.mxu1 %v4153_v33 }
 0x5f6   :  { %2546 = vmatpush3.msra.mxu1 %v3665_v22 }
 0x5f7   :  { %2547 = vmatprep.subr.mxu1 %v4153_v33 }
 0x5f8   :  { %2548 = vmatpush3.msra.mxu1 %v3672_v26  ;;  %v2708_v10 = vpop.eup %2707 }
 0x5f9   :  { %2552 = vmatprep.subr.mxu1 %v4153_v33  ;;  %v876_v16 = vmul.f32 %v2708_v10, %v3554_v17  ;;  %v3773_v10 = vld [vmem:[%s4132_s4 + $0xf0] sm:$0xff] }
 0x5fb   :  { %v2710_v11 = vpop.eup %2709 }
 0x5fc   :  { %v765_v14 = vmul.f32 %v2710_v11, %v760_v12  ;;  %v3779_v11 = vld [vmem:[%s4132_s4 + $0x70] sm:$0xff]  ;;  %v3785_v12 = vld [vmem:[%s4132_s4 + $0xe8] sm:$0xff] }
 0x5fe   :  { %941 = vmatprep.mubr.f32.mxu0 %v765_v14  ;;  %v3791_v14 = vld [vmem:[%s4132_s4 + $0x68] sm:$0xff] }
 0x5ff   :  { %942 = vmatmul.mubr.f32.vlgmr.msra.gmra.mxu0 %v876_v16  ;;  %v3797_v16 = vld [vmem:[%s4132_s4 + $0xe0] sm:$0xff] }
 0x600   :  { %2140 = vmatpush3.msra.mxu0 %v3120_v35  ;;  %v3711_v35 = vld [vmem:[%s4132_s4 + $0xf8] sm:$0xff] }
 0x601   :  { %2141 = vmatprep.subr.mxu0 %v3126_v36  ;;  %4157 = vst [vmem:[#allocation8_spill] sm:$0xff] %v3711_v35 }
 0x602   :  { %2142 = vmatpush3.msra.mxu0 %v3132_v37  ;;  %v4158_v37 = vld [vmem:[#allocation5_spill] sm:$0xff] }
 0x603   :  { %2143 = vmatprep.subr.mxu0 %v3138_v38 }
 0x604   :  { %2144 = vmatpush3.msra.mxu0 %v3144_v39 }
 0x605   :  { %2145 = vmatprep.subr.mxu0 %v3150_v40 }
 0x606   :  { %2146 = vmatpush3.msra.mxu0 %v3156_v41 }
 0x607   :  { %2147 = vmatprep.subr.mxu0 %v3162_v42 }
 0x608   :  { %2148 = vmatpush3.msra.mxu0 %v3168_v43 }
 0x609   :  { %2149 = vmatprep.subr.mxu0 %v3174_v44 }
 0x60a   :  { %2150 = vmatpush3.msra.mxu0 %v3180_v45 }
 0x60b   :  { %2151 = vmatprep.subr.mxu0 %v3186_v46 }
 0x60c   :  { %2152 = vmatpush3.msra.mxu0 %v3192_v47 }
 0x60d   :  { %2153 = vmatprep.subr.mxu0 %v3198_v48 }
 0x60e   :  { %2154 = vmatpush3.msra.mxu0 %v3204_v49 }
 0x60f   :  { %2155 = vmatprep.subr.mxu0 %v3210_v50 }
 0x610   :  { %2156 = vmatpush3.msra.mxu0 %v3216_v51 }
 0x611   :  { %2157 = vmatprep.subr.mxu0 %v3221_v52 }
 0x612   :  { %2158 = vmatpush3.msra.mxu0 %v3226_v53 }
 0x613   :  { %2159 = vmatprep.subr.mxu0 %v3232_v54 }
 0x614   :  { %2160 = vmatpush3.msra.mxu0 %v3238_v55 }
 0x615   :  { %2161 = vmatprep.subr.mxu0 %v3244_v56 }
 0x616   :  { %2162 = vmatpush3.msra.mxu0 %v3250_v57 }
 0x617   :  { %2163 = vmatprep.subr.mxu0 %v3256_v58 }
 0x618   :  { %2164 = vmatpush3.msra.mxu0 %v3262_v59 }
 0x619   :  { %2165 = vmatprep.subr.mxu0 %v3268_v60 }
 0x61a   :  { %2166 = vmatpush3.msra.mxu0 %v3274_v61 }
 0x61b   :  { %2167 = vmatprep.subr.mxu0 %v3280_v62 }
 0x61c   :  { %2168 = vmatpush3.msra.mxu0 %v3286_v63 }
 0x61d   :  { %2169 = vmatprep.subr.mxu0 %v3292_v4 }
 0x61e   :  { %2170 = vmatpush3.msra.mxu0 %v4155_v15 }
 0x61f   :  { %2191 = vmatprep.subr.mxu0 %v3711_v35 }
 0x699   :  { %v1031_v36 = vpop.f32.mrf.mxu1 }
 0x69a   :  { %v1035_v38 = vadd.f32 %v1031_v36, %v4158_v37  ;;  %v3803_v36 = vld [vmem:[%s4132_s4 + $0x60] sm:$0xff] }
 0x69b   :  { %v2516_v39 = vpop.f32.mrf.mxu1 }
 0x69c   :  { %v1894_v40 = vmul.f32 -1.442695, %v1035_v38  ;;  %2711 = vtanh.f32 %v1035_v38  ;;  %v3809_v38 = vld [vmem:[%s4132_s4 + $0xd8] sm:$0xff] }
 0x69d   :  { %v3815_v39 = vld [vmem:[%s4132_s4 + $0x58] sm:$0xff] }
 0x69e   :  { %2713 = vpow2.f32 %v1894_v40  ;;  %v3821_v40 = vld [vmem:[%s4132_s4 + $0xd0] sm:$0xff] }
 0x6a9   :  { %v2712_v41 = vpop.eup %2711 }
 0x6aa   :  { %1045 = vrot.lane.b32.xlu0 %v2712_v41, %s2876_s12  ;;  %v3827_v41 = vld [vmem:[%s4132_s4 + $0x50] sm:$0xff] }
 0x6ab   :  { %v2714_v42 = vpop.eup %2713 }
 0x6ac   :  { %v1039_v43 = vadd.f32 1.0, %v2714_v42  ;;  %v3833_v42 = vld [vmem:[%s4132_s4 + $0xc8] sm:$0xff] }
 0x6ae   :  { %2715 = vrcp.f32 %v1039_v43  ;;  %v3839_v43 = vld [vmem:[%s4132_s4 + $0x48] sm:$0xff] }
 0x6bb   :  { %v2716_v44 = vpop.eup %2715 }
 0x6bc   :  { %1043 = vrot.lane.b32.xlu1 %v2716_v44, %s2875_s2 }
 0x6bf   :  { %v2119_v45 = vpop.f32.mrf.mxu0 }
 0x6c0   :  { %1047 = vrot.lane.b32.xlu1 %v2716_v44, %s2874_s0 }
 0x6c1   :  { %v2120_v46 = vpop.f32.mrf.mxu0 }
 0x6c2   :  { %v2121_v47 = vadd.f32 %v2120_v46, %v2119_v45  ;;  %v3851_v45 = vld [vmem:[%s4132_s4 + $0x40] sm:$0xff]  ;;  %v3857_v46 = vld [vmem:[%s4132_s4 + $0xb8] sm:$0xff] }
 0x6c4   :  { %v944_v48 = vadd.f32 %v2121_v47, %v4154_v28  ;;  %v3863_v47 = vld [vmem:[%s4132_s4 + $0x38] sm:$0xff] }
 0x6c6   :  { %v1893_v49 = vmul.f32 -1.442695, %v944_v48  ;;  %2717 = vtanh.f32 %v944_v48  ;;  %v3869_v48 = vld [vmem:[%s4132_s4 + $0xb0] sm:$0xff] }
 0x6c8   :  { %2719 = vpow2.f32 %v1893_v49  ;;  %v3875_v49 = vld [vmem:[%s4132_s4 + $0x30] sm:$0xff] }
 0x6d3   :  { %v2718_v50 = vpop.eup %2717 }
 0x6d4   :  { %956 = vrot.lane.b32.xlu1 %v2718_v50, %s2876_s12  ;;  %v3881_v50 = vld [vmem:[%s4132_s4 + $0xa8] sm:$0xff] }
 0x6d5   :  { %v2720_v51 = vpop.eup %2719 }
 0x6d6   :  { %v950_v52 = vadd.f32 1.0, %v2720_v51  ;;  %v3887_v51 = vld [vmem:[%s4132_s4 + $0x28] sm:$0xff] }
 0x6d8   :  { %2721 = vrcp.f32 %v950_v52  ;;  %v3893_v52 = vld [vmem:[%s4132_s4 + $0xa0] sm:$0xff] }
 0x6e5   :  { %v2722_v53 = vpop.eup %2721 }
 0x6e6   :  { %954 = vrot.lane.b32.xlu0 %v2722_v53, %s2875_s2 }
 0x6ea   :  { %958 = vrot.lane.b32.xlu0 %v2722_v53, %s2874_s0 }
 0x71c   :  { %v1046_v54 = vpop.permute.xlu0 %1045 }
 0x71d   :  { %v1050_v56 = vmul.f32 %v2716_v44, %v1046_v54  ;;  %v3845_v44 = vld [vmem:[%s4132_s4 + $0xc0] sm:$0xff]  ;;  %v3905_v54 = vld [vmem:[%s4132_s4 + $0x98] sm:$0xff] }
 0x72e   :  { %v1044_v55 = vpop.permute.xlu1 %1043 }
 0x72f   :  { %v1049_v57 = vmul.f32 %v1044_v55, %v3551_v13  ;;  %v3911_v55 = vld [vmem:[%s4132_s4 + $0x18] sm:$0xff] }
 0x731   :  { %v3723_v58 = vadd.f32 %v1050_v56, %v1049_v57  ;;  %v3917_v56 = vld [vmem:[%s4132_s4 + $0x90] sm:$0xff] }
 0x732   :  { %v1048_v60 = vpop.permute.xlu1 %1047  ;;  %v3923_v57 = vld [vmem:[%s4132_s4 + $0x10] sm:$0xff] }
 0x733   :  { %2723 = vtanh.f32 %v3723_v58 }
 0x740   :  { %v2724_v59 = vpop.eup %2723 }
 0x741   :  { %v1053_v61 = vmul.f32 %v2724_v59, %v1048_v60  ;;  %v3929_v59 = vld [vmem:[%s4132_s4 + $0x88] sm:$0xff] }
 0x742   :  { %v3935_v60 = vld [vmem:[%s4132_s4 + $0x8] sm:$0xff] }
 0x743   :  { %2550 = vmatmul.mubr.f32.vlgmr.msra.gmra.mxu1 %v1053_v61  ;;  %v1895_v62 = vmul.f32 -1.442695, %v1053_v61 }
 0x744   :  { %2553 = vmatpush3.msra.mxu1 %v3561_v19  ;;  %2584 = vmatprep.mubr.msk.f32.mxu1 %vm2873_vm0, %v4153_v33 }
 0x745   :  { %2554 = vmatprep.subr.mxu1 %v4153_v33  ;;  %2725 = vpow2.f32 %v1895_v62  ;;  %v3947_v62 = vld [vmem:[%s4132_s4] sm:$0xff] }
 0x746   :  { %2555 = vmatpush3.msra.mxu1 %v3570_v1  ;;  %v957_v4 = vpop.permute.xlu1 %956 }
 0x747   :  { %2556 = vmatprep.subr.mxu1 %v4153_v33  ;;  %v961_v17 = vmul.f32 %v2722_v53, %v957_v4  ;;  %v3899_v53 = vld [vmem:[%s4132_s4 + $0x20] sm:$0xff] }
 0x748   :  { %2557 = vmatpush3.msra.mxu1 %v3577_v20 }
 0x749   :  { %2558 = vmatprep.subr.mxu1 %v4153_v33 }
 0x74a   :  { %2559 = vmatpush3.msra.mxu1 %v3584_v21 }
 0x74b   :  { %2560 = vmatprep.subr.mxu1 %v4153_v33 }
 0x74c   :  { %2561 = vmatpush3.msra.mxu1 %v3591_v7 }
 0x74d   :  { %2562 = vmatprep.subr.mxu1 %v4153_v33 }
 0x74e   :  { %2563 = vmatpush3.msra.mxu1 %v3598_v5 }
 0x74f   :  { %2564 = vmatprep.subr.mxu1 %v4153_v33 }
 0x750   :  { %2565 = vmatpush3.msra.mxu1 %v3605_v30 }
 0x751   :  { %2566 = vmatprep.subr.mxu1 %v4153_v33 }
 0x752   :  { %2567 = vmatpush3.msra.mxu1 %v3612_v29  ;;  %v2726_v63 = vpop.eup %2725 }
 0x753   :  { %2568 = vmatprep.subr.mxu1 %v4153_v33  ;;  %v1057_v15 = vadd.f32 1.0, %v2726_v63 }
 0x754   :  { %2569 = vmatpush3.msra.mxu1 %v3620_v32 }
 0x755   :  { %2570 = vmatprep.subr.mxu1 %v4153_v33  ;;  %2727 = vrcp.f32 %v1057_v15 }
 0x756   :  { %2571 = vmatpush3.msra.mxu1 %v3629_v0 }
 0x757   :  { %2572 = vmatprep.subr.mxu1 %v4153_v33 }
 0x758   :  { %v955_v13 = vpop.permute.xlu0 %954  ;;  %2573 = vmatpush3.msra.mxu1 %v3637_v9 }
 0x759   :  { %v960_v18 = vmul.f32 %v955_v13, %v3624_v31  ;;  %2574 = vmatprep.subr.mxu1 %v4153_v33  ;;  %v3767_v31 = vld [vmem:[%s4132_s4 + $0x78] sm:$0xff] }
 0x75a   :  { %2575 = vmatpush3.msra.mxu1 %v3644_v2 }
 0x75b   :  { %v3752_v8 = vadd.f32 %v961_v17, %v960_v18  ;;  %2576 = vmatprep.subr.mxu1 %v4153_v33 }
 0x75c   :  { %2577 = vmatpush3.msra.mxu1 %v3651_v3  ;;  %v959_v23 = vpop.permute.xlu0 %958 }
 0x75d   :  { %2729 = vtanh.f32 %v3752_v8  ;;  %2578 = vmatprep.subr.mxu1 %v4153_v33 }
 0x75e   :  { %2579 = vmatpush3.msra.mxu1 %v3658_v6 }
 0x75f   :  { %2580 = vmatprep.subr.mxu1 %v4153_v33 }
 0x760   :  { %2581 = vmatpush3.msra.mxu1 %v3665_v22 }
 0x761   :  { %2582 = vmatprep.subr.mxu1 %v4153_v33 }
 0x762   :  { %2583 = vmatpush3.msra.mxu1 %v3672_v26  ;;  %v2728_v27 = vpop.eup %2727 }
 0x763   :  { %2587 = vmatprep.subr.mxu1 %v4153_v33  ;;  %v1060_v25 = vmul.f32 %v2728_v27, %v1053_v61  ;;  %v3941_v61 = vld [vmem:[%s4132_s4 + $0x80] sm:$0xff] }
 0x76a   :  { %v2730_v34 = vpop.eup %2729 }
 0x76b   :  { %v964_v24 = vmul.f32 %v2730_v34, %v959_v23 }
 0x76d   :  { %1125 = vmatprep.mubr.f32.mxu0 %v964_v24 }
 0x76e   :  { %1126 = vmatmul.mubr.f32.vlgmr.msra.gmra.mxu0 %v1060_v25 }
 0x76f   :  { %2192 = vmatpush3.msra.mxu0 %v3767_v31 }
 0x770   :  { %2193 = vmatprep.subr.mxu0 %v3773_v10 }
 0x771   :  { %2194 = vmatpush3.msra.mxu0 %v3779_v11 }
 0x772   :  { %2195 = vmatprep.subr.mxu0 %v3785_v12 }
 0x773   :  { %2196 = vmatpush3.msra.mxu0 %v3791_v14 }
 0x774   :  { %2197 = vmatprep.subr.mxu0 %v3797_v16 }
 0x775   :  { %2198 = vmatpush3.msra.mxu0 %v3803_v36 }
 0x776   :  { %2199 = vmatprep.subr.mxu0 %v3809_v38 }
 0x777   :  { %2200 = vmatpush3.msra.mxu0 %v3815_v39 }
 0x778   :  { %2201 = vmatprep.subr.mxu0 %v3821_v40 }
 0x779   :  { %2202 = vmatpush3.msra.mxu0 %v3827_v41 }
 0x77a   :  { %2203 = vmatprep.subr.mxu0 %v3833_v42 }
 0x77b   :  { %2204 = vmatpush3.msra.mxu0 %v3839_v43 }
 0x77c   :  { %2205 = vmatprep.subr.mxu0 %v3845_v44 }
 0x77d   :  { %2206 = vmatpush3.msra.mxu0 %v3851_v45 }
 0x77e   :  { %2207 = vmatprep.subr.mxu0 %v3857_v46 }
 0x77f   :  { %2208 = vmatpush3.msra.mxu0 %v3863_v47 }
 0x780   :  { %2209 = vmatprep.subr.mxu0 %v3869_v48 }
 0x781   :  { %2210 = vmatpush3.msra.mxu0 %v3875_v49 }
 0x782   :  { %2211 = vmatprep.subr.mxu0 %v3881_v50 }
 0x783   :  { %2212 = vmatpush3.msra.mxu0 %v3887_v51 }
 0x784   :  { %2213 = vmatprep.subr.mxu0 %v3893_v52 }
 0x785   :  { %2214 = vmatpush3.msra.mxu0 %v3899_v53 }
 0x786   :  { %2215 = vmatprep.subr.mxu0 %v3905_v54 }
 0x787   :  { %2216 = vmatpush3.msra.mxu0 %v3911_v55 }
 0x788   :  { %2217 = vmatprep.subr.mxu0 %v3917_v56 }
 0x789   :  { %2218 = vmatpush3.msra.mxu0 %v3923_v57 }
 0x78a   :  { %2219 = vmatprep.subr.mxu0 %v3929_v59 }
 0x78b   :  { %2220 = vmatpush3.msra.mxu0 %v3935_v60 }
 0x78c   :  { %2221 = vmatprep.subr.mxu0 %v3941_v61 }
 0x78d   :  { %2222 = vmatpush3.msra.mxu0 %v3947_v62 }
 0x78e   :  { %2243 = vmatprep.subr.mxu0 %v3711_v35 }
 0x803   :  { %v1215_v63 = vpop.f32.mrf.mxu1 }
 0x804   :  { %v1220_v4 = vrot.slane %v1215_v63, 6 }
 0x805   :  { %v2551_v15 = vpop.f32.mrf.mxu1 }
 0x806   :  { %v1222_v13 = vadd.f32 %v1220_v4, %v4158_v37 }
 0x808   :  { %v1897_v17 = vmul.f32 -1.442695, %v1222_v13  ;;  %2731 = vtanh.f32 %v1222_v13 }
 0x80a   :  { %2733 = vpow2.f32 %v1897_v17 }
 0x815   :  { %v2732_v18 = vpop.eup %2731 }
 0x816   :  { %v1236_v27 = vrot.slane %v2732_v18, 2 }
 0x817   :  { %v2734_v34 = vpop.eup %2733 }
 0x818   :  { %v1226_v23 = vadd.f32 1.0, %v2734_v34  ;;  %1238 = vrot.lane.b32.xlu1 %v1236_v27, %s2876_s12 }
 0x81a   :  { %2735 = vrcp.f32 %v1226_v23 }
 0x827   :  { %v2736_v24 = vpop.eup %2735 }
 0x828   :  { %v1231_v25 = vrot.slane %v2736_v24, 2 }
 0x82a   :  { %1240 = vrot.lane.b32.xlu1 %v1231_v25, %s2874_s0  ;;  %1233 = vrot.lane.b32.xlu0 %v1231_v25, %s2875_s2 }
 0x82e   :  { %v2171_v63 = vpop.f32.mrf.mxu0 }
 0x830   :  { %v2172_v15 = vpop.f32.mrf.mxu0 }
 0x831   :  { %v2173_v35 = vadd.f32 %v2172_v15, %v2171_v63 }
 0x833   :  { %v1128_v4 = vadd.f32 %v2173_v35, %v4154_v28 }
 0x835   :  { %v1896_v13 = vmul.f32 -1.442695, %v1128_v4  ;;  %2737 = vtanh.f32 %v1128_v4 }
 0x837   :  { %2739 = vpow2.f32 %v1896_v13 }
 0x842   :  { %v2738_v17 = vpop.eup %2737 }
 0x843   :  { %1140 = vrot.lane.b32.xlu1 %v2738_v17, %s2876_s12 }
 0x844   :  { %v2740_v18 = vpop.eup %2739 }
 0x845   :  { %v1134_v27 = vadd.f32 1.0, %v2740_v18 }
 0x847   :  { %2741 = vrcp.f32 %v1134_v27 }
 0x854   :  { %v2742_v34 = vpop.eup %2741 }
 0x855   :  { %1138 = vrot.lane.b32.xlu0 %v2742_v34, %s2875_s2 }
 0x859   :  { %1142 = vrot.lane.b32.xlu0 %v2742_v34, %s2874_s0 }
 0x88a   :  { %v1239_v23 = vpop.permute.xlu1 %1238 }
 0x88b   :  { %v1244_v25 = vrot.slane %v1239_v23, 6 }
 0x88d   :  { %v1246_v37 = vmul.f32 %v2736_v24, %v1244_v25 }
 0x88f   :  { %v1248_v15 = vrot.slane %v1246_v37, 2  ;;  %v4160_v37 = vld [vmem:[#allocation5_spill] sm:$0xff] }
 0x89c   :  { %v1234_v63 = vpop.permute.xlu0 %1233  ;;  %v1241_v13 = vpop.permute.xlu1 %1240 }
 0x89d   :  { %v1242_v28 = vmul.f32 %v1234_v63, %v3723_v58 }
 0x89f   :  { %v3960_v35 = vadd.f32 %v1248_v15, %v1242_v28 }
 0x8a1   :  { %2743 = vtanh.f32 %v3960_v35 }
 0x8ae   :  { %v2744_v4 = vpop.eup %2743 }
 0x8af   :  { %v1252_v17 = vmul.f32 %v2744_v4, %v1241_v13  ;;  %v4040_v13 = vld [vmem:[%s4133_s5] ss:$0 sm:$0xff] }
 0x8b1   :  { %2585 = vmatmul.mubr.f32.vlgmr.msra.gmra.mxu1 %v1252_v17  ;;  %v1898_v18 = vmul.f32 -1.442695, %v1252_v17 }
 0x8b2   :  { %2588 = vmatpush3.msra.mxu1 %v3561_v19  ;;  %2619 = vmatprep.mubr.msk.f32.mxu1 %vm2873_vm0, %v4153_v33 }
 0x8b3   :  { %2589 = vmatprep.subr.mxu1 %v4153_v33  ;;  %2745 = vpow2.f32 %v1898_v18 }
 0x8b4   :  { %2590 = vmatpush3.msra.mxu1 %v3570_v1 }
 0x8b5   :  { %2591 = vmatprep.subr.mxu1 %v4153_v33  ;;  %v1141_v1 = vpop.permute.xlu1 %1140 }
 0x8b6   :  { %2592 = vmatpush3.msra.mxu1 %v3577_v20 }
 0x8b7   :  { %2593 = vmatprep.subr.mxu1 %v4153_v33 }
 0x8b8   :  { %2594 = vmatpush3.msra.mxu1 %v3584_v21 }
 0x8b9   :  { %2595 = vmatprep.subr.mxu1 %v4153_v33 }
 0x8ba   :  { %2596 = vmatpush3.msra.mxu1 %v3591_v7  ;;  %v1145_v7 = vmul.f32 %v2742_v34, %v1141_v1 }
 0x8bb   :  { %2597 = vmatprep.subr.mxu1 %v4153_v33 }
 0x8bc   :  { %2598 = vmatpush3.msra.mxu1 %v3598_v5 }
 0x8bd   :  { %2599 = vmatprep.subr.mxu1 %v4153_v33 }
 0x8be   :  { %2600 = vmatpush3.msra.mxu1 %v3605_v30 }
 0x8bf   :  { %2601 = vmatprep.subr.mxu1 %v4153_v33 }
 0x8c0   :  { %2602 = vmatpush3.msra.mxu1 %v3612_v29  ;;  %v2746_v19 = vpop.eup %2745 }
 0x8c1   :  { %2603 = vmatprep.subr.mxu1 %v4153_v33  ;;  %v1256_v20 = vadd.f32 1.0, %v2746_v19 }
 0x8c2   :  { %2604 = vmatpush3.msra.mxu1 %v3620_v32 }
 0x8c3   :  { %2605 = vmatprep.subr.mxu1 %v4153_v33  ;;  %2747 = vrcp.f32 %v1256_v20 }
 0x8c4   :  { %2606 = vmatpush3.msra.mxu1 %v3629_v0 }
 0x8c5   :  { %2607 = vmatprep.subr.mxu1 %v4153_v33 }
 0x8c6   :  { %2608 = vmatpush3.msra.mxu1 %v3637_v9 }
 0x8c7   :  { %v1139_v21 = vpop.permute.xlu0 %1138  ;;  %2609 = vmatprep.subr.mxu1 %v4153_v33 }
 0x8c8   :  { %v1144_v5 = vmul.f32 %v1139_v21, %v3752_v8  ;;  %2610 = vmatpush3.msra.mxu1 %v3644_v2 }
 0x8c9   :  { %2611 = vmatprep.subr.mxu1 %v4153_v33 }
 0x8ca   :  { %v3990_v30 = vadd.f32 %v1145_v7, %v1144_v5  ;;  %2612 = vmatpush3.msra.mxu1 %v3651_v3  ;;  %v4159_v3 = vld [vmem:[#allocation8_spill] sm:$0xff] }
 0x8cb   :  { %2613 = vmatprep.subr.mxu1 %v4153_v33  ;;  %v1143_v0 = vpop.permute.xlu0 %1142 }
 0x8cc   :  { %2749 = vtanh.f32 %v3990_v30  ;;  %2614 = vmatpush3.msra.mxu1 %v3658_v6 }
 0x8cd   :  { %2615 = vmatprep.subr.mxu1 %v4153_v33 }
 0x8ce   :  { %2616 = vmatpush3.msra.mxu1 %v3665_v22 }
 0x8cf   :  { %2617 = vmatprep.subr.mxu1 %v4153_v33 }
 0x8d0   :  { %2618 = vmatpush3.msra.mxu1 %v3672_v26  ;;  %v2748_v29 = vpop.eup %2747 }
 0x8d1   :  { %2622 = vmatprep.subr.mxu1 %v4153_v33  ;;  %v1259_v2 = vmul.f32 %v2748_v29, %v1252_v17 }
 0x8d9   :  { %v2750_v32 = vpop.eup %2749 }
 0x8da   :  { %v1148_v9 = vmul.f32 %v2750_v32, %v1143_v0 }
 0x8dc   :  { %1324 = vmatprep.mubr.f32.mxu0 %v1148_v9 }
 0x8dd   :  { %1325 = vmatmul.mubr.f32.vlgmr.msra.gmra.mxu0 %v1259_v2 }
 0x8de   :  { %2244 = vmatpush3.msra.mxu0 %v3767_v31 }
 0x8df   :  { %2245 = vmatprep.subr.mxu0 %v3773_v10 }
 0x8e0   :  { %2246 = vmatpush3.msra.mxu0 %v3779_v11 }
 0x8e1   :  { %2247 = vmatprep.subr.mxu0 %v3785_v12 }
 0x8e2   :  { %2248 = vmatpush3.msra.mxu0 %v3791_v14 }
 0x8e3   :  { %2249 = vmatprep.subr.mxu0 %v3797_v16 }
 0x8e4   :  { %2250 = vmatpush3.msra.mxu0 %v3803_v36 }
 0x8e5   :  { %2251 = vmatprep.subr.mxu0 %v3809_v38 }
 0x8e6   :  { %2252 = vmatpush3.msra.mxu0 %v3815_v39 }
 0x8e7   :  { %2253 = vmatprep.subr.mxu0 %v3821_v40 }
 0x8e8   :  { %2254 = vmatpush3.msra.mxu0 %v3827_v41 }
 0x8e9   :  { %2255 = vmatprep.subr.mxu0 %v3833_v42 }
 0x8ea   :  { %2256 = vmatpush3.msra.mxu0 %v3839_v43 }
 0x8eb   :  { %2257 = vmatprep.subr.mxu0 %v3845_v44 }
 0x8ec   :  { %2258 = vmatpush3.msra.mxu0 %v3851_v45 }
 0x8ed   :  { %2259 = vmatprep.subr.mxu0 %v3857_v46 }
 0x8ee   :  { %2260 = vmatpush3.msra.mxu0 %v3863_v47 }
 0x8ef   :  { %2261 = vmatprep.subr.mxu0 %v3869_v48 }
 0x8f0   :  { %2262 = vmatpush3.msra.mxu0 %v3875_v49 }
 0x8f1   :  { %2263 = vmatprep.subr.mxu0 %v3881_v50 }
 0x8f2   :  { %2264 = vmatpush3.msra.mxu0 %v3887_v51 }
 0x8f3   :  { %2265 = vmatprep.subr.mxu0 %v3893_v52 }
 0x8f4   :  { %2266 = vmatpush3.msra.mxu0 %v3899_v53 }
 0x8f5   :  { %2267 = vmatprep.subr.mxu0 %v3905_v54 }
 0x8f6   :  { %2268 = vmatpush3.msra.mxu0 %v3911_v55 }
 0x8f7   :  { %2269 = vmatprep.subr.mxu0 %v3917_v56 }
 0x8f8   :  { %2270 = vmatpush3.msra.mxu0 %v3923_v57 }
 0x8f9   :  { %2271 = vmatprep.subr.mxu0 %v3929_v59 }
 0x8fa   :  { %2272 = vmatpush3.msra.mxu0 %v3935_v60 }
 0x8fb   :  { %2273 = vmatprep.subr.mxu0 %v3941_v61 }
 0x8fc   :  { %2274 = vmatpush3.msra.mxu0 %v3947_v62 }
 0x8fd   :  { %2295 = vmatprep.subr.mxu0 %v4159_v3 }
 0x971   :  { %v1414_v6 = vpop.f32.mrf.mxu1 }
 0x972   :  { %v1419_v22 = vrot.slane %v1414_v6, 4 }
 0x973   :  { %v2586_v26 = vpop.f32.mrf.mxu1 }
 0x974   :  { %v1421_v58 = vadd.f32 %v1419_v22, %v4160_v37 }
 0x976   :  { %v1900_v8 = vmul.f32 -1.442695, %v1421_v58  ;;  %2751 = vtanh.f32 %v1421_v58 }
 0x978   :  { %2753 = vpow2.f32 %v1900_v8 }
 0x983   :  { %v2752_v24 = vpop.eup %2751 }
 0x984   :  { %v1435_v27 = vrot.slane %v2752_v24, 4 }
 0x985   :  { %v2754_v34 = vpop.eup %2753 }
 0x986   :  { %v1425_v23 = vadd.f32 1.0, %v2754_v34  ;;  %1437 = vrot.lane.b32.xlu1 %v1435_v27, %s2876_s12 }
 0x988   :  { %2755 = vrcp.f32 %v1425_v23 }
 0x995   :  { %v2756_v25 = vpop.eup %2755 }
 0x996   :  { %v1430_v63 = vrot.slane %v2756_v25, 4 }
 0x998   :  { %1439 = vrot.lane.b32.xlu1 %v1430_v63, %s2874_s0  ;;  %1432 = vrot.lane.b32.xlu0 %v1430_v63, %s2875_s2 }
 0x99d   :  { %v2223_v15 = vpop.f32.mrf.mxu0 }
 0x99f   :  { %v2224_v28 = vpop.f32.mrf.mxu0 }
 0x9a0   :  { %v2225_v4 = vadd.f32 %v2224_v28, %v2223_v15 }
 0x9a2   :  { %v1327_v17 = vadd.f32 %v4040_v13, %v2225_v4 }
 0x9a4   :  { %v1899_v18 = vmul.f32 -1.442695, %v1327_v17  ;;  %2757 = vtanh.f32 %v1327_v17 }
 0x9a6   :  { %2759 = vpow2.f32 %v1899_v18 }
 0x9b1   :  { %v2758_v19 = vpop.eup %2757 }
 0x9b2   :  { %1339 = vrot.lane.b32.xlu1 %v2758_v19, %s2876_s12 }
 0x9b3   :  { %v2760_v1 = vpop.eup %2759 }
 0x9b4   :  { %v1333_v20 = vadd.f32 1.0, %v2760_v1 }
 0x9b6   :  { %2761 = vrcp.f32 %v1333_v20 }
 0x9c3   :  { %v2762_v21 = vpop.eup %2761 }
 0x9c4   :  { %1337 = vrot.lane.b32.xlu0 %v2762_v21, %s2875_s2 }
 0x9c8   :  { %1341 = vrot.lane.b32.xlu0 %v2762_v21, %s2874_s0 }
 0x9f8   :  { %v1438_v7 = vpop.permute.xlu1 %1437 }
 0x9f9   :  { %v1443_v5 = vrot.slane %v1438_v7, 4 }
 0x9fb   :  { %v1445_v29 = vmul.f32 %v2756_v25, %v1443_v5 }
 0x9fd   :  { %v1447_v0 = vrot.slane %v1445_v29, 4 }
 0xa0a   :  { %v1433_v32 = vpop.permute.xlu0 %1432  ;;  %v1440_v6 = vpop.permute.xlu1 %1439 }
 0xa0b   :  { %v1441_v9 = vmul.f32 %v1433_v32, %v3960_v35 }
 0xa0d   :  { %v4047_v2 = vadd.f32 %v1447_v0, %v1441_v9 }
 0xa0f   :  { %2763 = vtanh.f32 %v4047_v2 }
 0xa1c   :  { %v2764_v3 = vpop.eup %2763 }
 0xa1d   :  { %v1451_v22 = vmul.f32 %v2764_v3, %v1440_v6 }
 0xa1f   :  { %2620 = vmatmul.mubr.f32.vlgmr.msra.gmra.mxu1 %v1451_v22  ;;  %v1901_v26 = vmul.f32 -1.442695, %v1451_v22 }
 0xa20   :  { %2630 = vmatprep.mubr.msk.f32.mxu1 %vm2873_vm0, %v4153_v33 }
 0xa21   :  { %2765 = vpow2.f32 %v1901_v26 }
 0xa24   :  { %v1340_v8 = vpop.permute.xlu1 %1339 }
 0xa25   :  { %v1344_v34 = vmul.f32 %v2762_v21, %v1340_v8 }
 0xa2e   :  { %v2766_v58 = vpop.eup %2765 }
 0xa2f   :  { %v1455_v24 = vadd.f32 1.0, %v2766_v58 }
 0xa31   :  { %2767 = vrcp.f32 %v1455_v24 }
 0xa36   :  { %v1338_v27 = vpop.permute.xlu0 %1337 }
 0xa37   :  { %v1343_v35 = vmul.f32 %v1338_v27, %v3990_v30 }
 0xa39   :  { %v4053_v23 = vadd.f32 %v1344_v34, %v1343_v35 }
 0xa3a   :  { %v1342_v15 = vpop.permute.xlu0 %1341 }
 0xa3b   :  { %2769 = vtanh.f32 %v4053_v23 }
 0xa3e   :  { %v2768_v25 = vpop.eup %2767 }
 0xa3f   :  { %v1458_v4 = vmul.f32 %v2768_v25, %v1451_v22 }
 0xa48   :  { %v2770_v63 = vpop.eup %2769 }
 0xa49   :  { %v1347_v28 = vmul.f32 %v2770_v63, %v1342_v15 }
 0xa4b   :  { %1523 = vmatprep.mubr.f32.mxu0 %v1347_v28 }
 0xa4c   :  { %1524 = vmatmul.mubr.f32.vlgmr.msra.gmra.mxu0 %v1458_v4 }
 0xa4d   :  { %2296 = vmatpush3.msra.mxu0 %v3767_v31 }
 0xa4e   :  { %2297 = vmatprep.subr.mxu0 %v3773_v10 }
 0xa4f   :  { %2298 = vmatpush3.msra.mxu0 %v3779_v11 }
 0xa50   :  { %2299 = vmatprep.subr.mxu0 %v3785_v12 }
 0xa51   :  { %2300 = vmatpush3.msra.mxu0 %v3791_v14 }
 0xa52   :  { %2301 = vmatprep.subr.mxu0 %v3797_v16 }
 0xa53   :  { %2302 = vmatpush3.msra.mxu0 %v3803_v36 }
 0xa54   :  { %2303 = vmatprep.subr.mxu0 %v3809_v38 }
 0xa55   :  { %2304 = vmatpush3.msra.mxu0 %v3815_v39 }
 0xa56   :  { %2305 = vmatprep.subr.mxu0 %v3821_v40 }
 0xa57   :  { %2306 = vmatpush3.msra.mxu0 %v3827_v41 }
 0xa58   :  { %2307 = vmatprep.subr.mxu0 %v3833_v42 }
 0xa59   :  { %2308 = vmatpush3.msra.mxu0 %v3839_v43 }
 0xa5a   :  { %2309 = vmatprep.subr.mxu0 %v3845_v44 }
 0xa5b   :  { %2310 = vmatpush3.msra.mxu0 %v3851_v45 }
 0xa5c   :  { %2311 = vmatprep.subr.mxu0 %v3857_v46 }
 0xa5d   :  { %2312 = vmatpush3.msra.mxu0 %v3863_v47 }
 0xa5e   :  { %2313 = vmatprep.subr.mxu0 %v3869_v48 }
 0xa5f   :  { %2314 = vmatpush3.msra.mxu0 %v3875_v49 }
 0xa60   :  { %2315 = vmatprep.subr.mxu0 %v3881_v50 }
 0xa61   :  { %2316 = vmatpush3.msra.mxu0 %v3887_v51 }
 0xa62   :  { %2317 = vmatprep.subr.mxu0 %v3893_v52 }
 0xa63   :  { %2318 = vmatpush3.msra.mxu0 %v3899_v53 }
 0xa64   :  { %2319 = vmatprep.subr.mxu0 %v3905_v54 }
 0xa65   :  { %2320 = vmatpush3.msra.mxu0 %v3911_v55 }
 0xa66   :  { %2321 = vmatprep.subr.mxu0 %v3917_v56 }
 0xa67   :  { %2322 = vmatpush3.msra.mxu0 %v3923_v57 }
 0xa68   :  { %2323 = vmatprep.subr.mxu0 %v3929_v59 }
 0xa69   :  { %2324 = vmatpush3.msra.mxu0 %v3935_v60 }
 0xa6a   :  { %2325 = vmatprep.subr.mxu0 %v3941_v61 }
 0xa6b   :  { %2326 = vmatpush3.msra.mxu0 %v3947_v62 }
 0xadf   :  { %v1613_v31 = vpop.f32.mrf.mxu1 }
 0xae0   :  { %v1618_v10 = vrot.slane %v1613_v31, 2 }
 0xae1   :  { %v2621_v11 = vpop.f32.mrf.mxu1 }
 0xae2   :  { %v1620_v12 = vadd.f32 %v1618_v10, %v4160_v37 }
 0xae4   :  { %v1903_v14 = vmul.f32 -1.442695, %v1620_v12  ;;  %2771 = vtanh.f32 %v1620_v12  ;;  %v1780_v12 = vld [vmem:[%s4136_s8 + $0x18] sm:$0xff] }
 0xae5   :  { %2623 = vmatpush3.msra.mxu1 %v1780_v12 }
 0xae6   :  { %2773 = vpow2.f32 %v1903_v14  ;;  %2624 = vmatprep.subr.mxu1 %v4153_v33  ;;  %v1779_v14 = vld [vmem:[%s4136_s8 + $0x10] sm:$0xff] }
 0xae7   :  { %2625 = vmatpush3.msra.mxu1 %v1779_v14 }
 0xae8   :  { %2626 = vmatprep.subr.mxu1 %v4153_v33 }
 0xaf1   :  { %v2772_v16 = vpop.eup %2771 }
 0xaf2   :  { %v1634_v36 = vrot.slane %v2772_v16, 6  ;;  %v1778_v16 = vld [vmem:[%s4136_s8 + $0x8] sm:$0xff] }
 0xaf3   :  { %v2774_v38 = vpop.eup %2773  ;;  %2627 = vmatpush3.msra.mxu1 %v1778_v16 }
 0xaf4   :  { %v1624_v39 = vadd.f32 1.0, %v2774_v38  ;;  %1636 = vrot.lane.b32.xlu1 %v1634_v36, %s2876_s12  ;;  %v1777_v36 = vld [vmem:[%s4136_s8] sm:$0xff]  ;;  %2628 = vmatprep.subr.mxu1 %v4153_v33 }
 0xaf5   :  { %2629 = vmatpush3.msra.mxu1 %v1777_v36  ;;  %v1908_v33 = vld [vmem:[%s4137_s9] ss:$0 sm:$0xff] }
 0xaf6   :  { %2775 = vrcp.f32 %v1624_v39 }
 0xb03   :  { %v2776_v40 = vpop.eup %2775 }
 0xb04   :  { %v1629_v41 = vrot.slane %v2776_v40, 6 }
 0xb06   :  { %1638 = vrot.lane.b32.xlu1 %v1629_v41, %s2874_s0  ;;  %1631 = vrot.lane.b32.xlu0 %v1629_v41, %s2875_s2 }
 0xb0c   :  { %v2275_v42 = vpop.f32.mrf.mxu0 }
 0xb0e   :  { %v2276_v43 = vpop.f32.mrf.mxu0 }
 0xb0f   :  { %v2277_v44 = vadd.f32 %v2276_v43, %v2275_v42  ;;  %v1906_v42 = vld [vmem:[%s4134_s6] ss:$0 sm:$0xff]  ;;  %s2850_s6 = scalar_lea.vmem %s1871_s22, 32 }
 0xb10   :  { %p2851_p0 = scmp.ne.s32.totalorder %s1871_s22, %s2850_s6  ;;  %p2856_p2 = scmp.lt.s32.totalorder %s2850_s6, %s2850_s6 }
 0xb11   :  { %v1526_v45 = vadd.f32 %v4040_v13, %v2277_v44  ;;  %v1907_v44 = vld [vmem:[%s4135_s7] ss:$0 sm:$0xff] }
 0xb12   :  { %p2857_p3 = por %p2856_p2, %p2855_p1 }
 0xb13   :  { %v1902_v46 = vmul.f32 -1.442695, %v1526_v45  ;;  %2777 = vtanh.f32 %v1526_v45 }
 0xb14   :  { %p2858_p4 = pnand %p2857_p3, %p2851_p0 }
 0xb15   :  { %2779 = vpow2.f32 %v1902_v46 }
 0xb20   :  { %v2778_v47 = vpop.eup %2777 }
 0xb21   :  { %1538 = vrot.lane.b32.xlu1 %v2778_v47, %s2876_s12 }
 0xb22   :  { %v2780_v48 = vpop.eup %2779 }
 0xb23   :  { %v1532_v49 = vadd.f32 1.0, %v2780_v48 }
 0xb25   :  { %2781 = vrcp.f32 %v1532_v49 }
 0xb32   :  { %v2782_v50 = vpop.eup %2781 }
 0xb33   :  { %1536 = vrot.lane.b32.xlu0 %v2782_v50, %s2875_s2 }
 0xb37   :  { %1540 = vrot.lane.b32.xlu0 %v2782_v50, %s2874_s0 }
 0xb66   :  { %v1637_v51 = vpop.permute.xlu1 %1636 }
 0xb67   :  { %v1642_v52 = vrot.slane %v1637_v51, 2 }
 0xb69   :  { %v1644_v53 = vmul.f32 %v2776_v40, %v1642_v52 }
 0xb6b   :  { %v1646_v55 = vrot.slane %v1644_v53, 6 }
 0xb78   :  { %v1632_v54 = vpop.permute.xlu0 %1631  ;;  %v1639_v60 = vpop.permute.xlu1 %1638 }
 0xb79   :  { %v1640_v56 = vmul.f32 %v1632_v54, %v4047_v2 }
 0xb7b   :  { %v1648_v57 = vadd.f32 %v1646_v55, %v1640_v56 }
 0xb7d   :  { %2783 = vtanh.f32 %v1648_v57 }
 0xb8a   :  { %v2784_v59 = vpop.eup %2783 }
 0xb8b   :  { %v1650_v61 = vmul.f32 %v2784_v59, %v1639_v60 }
 0xb8d   :  { %v1904_v62 = vmul.f32 -1.442695, %v1650_v61 }
 0xb8f   :  { %2785 = vpow2.f32 %v1904_v62 }
 0xb93   :  { %v1539_v37 = vpop.permute.xlu1 %1538 }
 0xb94   :  { %v1543_v19 = vmul.f32 %v2782_v50, %v1539_v37 }
 0xb9c   :  { %v2786_v30 = vpop.eup %2785 }
 0xb9d   :  { %v1654_v18 = vadd.f32 1.0, %v2786_v30 }
 0xb9f   :  { %2787 = vrcp.f32 %v1654_v18 }
 0xba5   :  { %v1537_v17 = vpop.permute.xlu0 %1536 }
 0xba6   :  { %v1542_v1 = vmul.f32 %v1537_v17, %v4053_v23 }
 0xba8   :  { %v1544_v20 = vadd.f32 %v1543_v19, %v1542_v1 }
 0xba9   :  { %v1541_v5 = vpop.permute.xlu0 %1540 }
 0xbaa   :  { %2789 = vtanh.f32 %v1544_v20 }
 0xbac   :  { %v2788_v21 = vpop.eup %2787 }
 0xbad   :  { %v1657_v32 = vmul.f32 %v2788_v21, %v1650_v61 }
 0xbb7   :  { %v2790_v7 = vpop.eup %2789 }
 0xbb8   :  { %v1546_v29 = vmul.f32 %v2790_v7, %v1541_v5 }
 0xbba   :  { %1722 = vmatprep.mubr.f32.mxu0 %v1546_v29 }
 0xbbb   :  { %1723 = vmatmul.mubr.f32.vlgmr.msra.gmra.mxu0 %v1657_v32 }
 0xc7b   :  { %v2327_v0 = vpop.f32.mrf.mxu0 }
 0xc7d   :  { %v2328_v9 = vpop.f32.mrf.mxu0 }
 0xc7e   :  { %v2329_v2 = vadd.f32 %v2328_v9, %v2327_v0 }
 0xc80   :  { %v1725_v3 = vadd.f32 %v4040_v13, %v2329_v2 }
 0xc82   :  { %v1905_v6 = vmul.f32 -1.442695, %v1725_v3  ;;  %2791 = vtanh.f32 %v1725_v3 }
 0xc84   :  { %2793 = vpow2.f32 %v1905_v6 }
 0xc8f   :  { %v2792_v22 = vpop.eup %2791 }
 0xc90   :  { %1737 = vrot.lane.b32.xlu0 %v2792_v22, %s2876_s12 }
 0xc91   :  { %v2794_v26 = vpop.eup %2793 }
 0xc92   :  { %v1731_v58 = vadd.f32 1.0, %v2794_v26 }
 0xc94   :  { %2795 = vrcp.f32 %v1731_v58 }
 0xca1   :  { %v2796_v8 = vpop.eup %2795 }
 0xca2   :  { %1735 = vrot.lane.b32.xlu1 %v2796_v8, %s2875_s2 }
 0xca6   :  { %1739 = vrot.lane.b32.xlu1 %v2796_v8, %s2874_s0 }
 0xd02   :  { %v1738_v24 = vpop.permute.xlu0 %1737 }
 0xd03   :  { %v1742_v34 = vmul.f32 %v2796_v8, %v1738_v24 }
 0xd14   :  { %v1736_v27 = vpop.permute.xlu1 %1735 }
 0xd15   :  { %v1741_v35 = vmul.f32 %v1736_v27, %v1544_v20 }
 0xd17   :  { %v1743_v23 = vadd.f32 %v1742_v34, %v1741_v35 }
 0xd18   :  { %v1740_v25 = vpop.permute.xlu1 %1739 }
 0xd19   :  { %2797 = vtanh.f32 %v1743_v23 }
 0xd26   :  { %v2798_v13 = vpop.eup %2797 }
 0xd27   :  { %v1745_v63 = vmul.f32 %v2798_v13, %v1740_v25 }
 0xd29   :  { %v1747_v15 = vsel %vm1746_vm2, %v1745_v63, 0.0 }
 0xd2a   :  { %1748 = vadd.xlane.f32.xlu0 %v1747_v15 }
 0xdb3   :  { %v1749_v28 = vpop.xlane.xlu0 %1748 }
 0xdb4   :  { %v1751_v4 = vmul.f32 0.03125, %v1749_v28 }
 0xdb6   :  { %v1752_v31 = vsub.f32 %v1745_v63, %v1751_v4 }
 0xdb8   :  { %v1753_v10 = vmul.f32 %v1752_v31, %v1752_v31 }
 0xdba   :  { %v1754_v11 = vsel %vm1746_vm2, %v1753_v10, 0.0 }
 0xdbb   :  { %1755 = vadd.xlane.f32.xlu1 %v1754_v11 }
 0xe44   :  { %v1756_v38 = vpop.xlane.xlu1 %1755 }
 0xe45   :  { %v1757_v39 = vmul.f32 0.03125, %v1756_v38 }
 0xe47   :  { %v1758_v40 = vadd.f32 1e-05, %v1757_v39 }
 0xe49   :  { %2799 = vrsqrt.f32 %v1758_v40 }
 0xe56   :  { %v2800_v41 = vpop.eup %2799 }
 0xe57   :  { %v1760_v43 = vmul.f32 %v2800_v41, %v1752_v31 }
 0xe59   :  { %v1768_v45 = vmul.f32 %v1906_v42, %v1760_v43 }
 0xe5b   :  { %v1776_v46 = vadd.f32 %v1907_v44, %v1768_v45 }
 0xe5d   :  { %2631 = vmatmul.mubr.msk.f32.vlgmr.msra.gmra.mxu1 %vm1788_vm3, %v1776_v46 }
 0xf1d   :  { %v1858_v47 = vpop.f32.mrf.mxu1 }
 0xf1e   :  { %v1859_v48 = vadd.f32 %v1908_v33, %v1858_v47 }
 0xf1f   :  { %v2632_v49 = vpop.f32.mrf.mxu1 }
 0xf20   :  { %1863 = vst.msk [vmem:[#allocation2] sm:$0x3] %vm1862_vm4, %v1859_v48 }
 0xf21   :  { %2861 = shalt.err (!%p2858_p4)
}
 0xf22   :  { %1873 = dma.vmem_to_hbm [thread:$0]  %s1871_s22, 32, %s4138_s10, [#allocation3]  }
 0xf23   :  { %2870 = dma.done.wait [#allocation3], 32  }
 0xf24   :  { %2871 = vsyncadd [#allocation3], 4294967264 }
 0xf25   :  { %1877 = vsyncpa [#allocation3], 1 }

</bundles_post_ra>
